<compile_context>
chip_gen: v7x
topology: tpu7x:2x2x1
jax: 0.10.0
libtpu: 0.0.40
codegen_flags: <defaults>
</compile_context>

<pallas_src>
import numpy as np
import jax
import jax.numpy as jnp
from jax.experimental import pallas as pl
from jax.experimental.pallas import tpu as pltpu

BN_EPS = 1e-5
KSIZE = 4
STRIDE = 2
LEAKY_SLOPE = 0.2


def _conv_out(size):
    return (size - KSIZE) // STRIDE + 1


# ---------------------------------------------------------------------------
# Fused kernel: conv1 -> BN -> LReLU -> conv2 -> BN -> LReLU -> conv3 (+bias)
# ---------------------------------------------------------------------------
def _critic_kernel(x_ref,
                   sel1_ref, w21_ref, pa1_ref, pb1_ref,
                   sel2_ref, w22_ref, pa2_ref, pb2_ref,
                   sel3_ref, w23_ref, b3_ref,
                   o_ref):
    def conv(a_bf16, sel_ref, w2_ref):
        # a_bf16: (M_in, W*Cin) bf16  ->  (M_out, Wo*Cout) f32
        acc = None
        for i in range(KSIZE):
            # 0/1 row selection (block-diagonal per batch sample): exact in bf16.
            rows = jnp.dot(sel_ref[i], a_bf16,
                           preferred_element_type=jnp.float32)
            # rows are exactly bf16-representable values -> cast is exact.
            rows = rows.astype(jnp.bfloat16)
            part = jnp.dot(rows, w2_ref[i],
                           preferred_element_type=jnp.float32)
            acc = part if acc is None else acc + part
        return acc

    def bn_lrelu(y, pa_ref, pb_ref):
        # y: (M, Wo*C) f32.  Train-mode batch stats, all in f32.
        # Row stats: sublane mean (XLU).  Per-channel column average of the
        # interleaved (wo, c) layout: factored projector P = A @ B with
        # A: (Wo*C, C) (includes 1/Wo), B: (C, Wo*C) 0/1 broadcast-back.
        pa = pa_ref[...]
        pb = pb_ref[...]
        row_mean = jnp.mean(y, axis=0, keepdims=True)              # (1, Wo*C)
        mean_b = jnp.dot(jnp.dot(row_mean, pa,
                                 preferred_element_type=jnp.float32),
                         pb, preferred_element_type=jnp.float32)   # (1, Wo*C)
        d = y - mean_b
        row_var = jnp.mean(d * d, axis=0, keepdims=True)           # (1, Wo*C)
        var_b = jnp.dot(jnp.dot(row_var, pa,
                                preferred_element_type=jnp.float32),
                        pb, preferred_element_type=jnp.float32)    # (1, Wo*C)
        yn = d * jax.lax.rsqrt(var_b + BN_EPS)
        return jnp.where(yn >= 0.0, yn, LEAKY_SLOPE * yn)

    a0 = x_ref[...]                                   # already bf16
    a1 = bn_lrelu(conv(a0, sel1_ref, w21_ref), pa1_ref, pb1_ref)
    a2 = bn_lrelu(conv(a1.astype(jnp.bfloat16), sel2_ref, w22_ref),
                  pa2_ref, pb2_ref)
    a3 = conv(a2.astype(jnp.bfloat16), sel3_ref, w23_ref) + b3_ref[...]
    o_ref[...] = a3.astype(o_ref.dtype)


# ---------------------------------------------------------------------------
# Host-side constant packing (weights -> kernel operands), done once.
# ---------------------------------------------------------------------------
def _row_select(batch, h_in, h_out, tap):
    """(N*Ho, N*H) block-diagonal 0/1 matrix selecting row STRIDE*ho + tap."""
    m = np.zeros((batch * h_out, batch * h_in), np.float32)
    for n in range(batch):
        for ho in range(h_out):
            m[n * h_out + ho, n * h_in + STRIDE * ho + tap] = 1.0
    return jnp.asarray(m)


def _fold_weight(wgt_tap, w_in, w_out):
    """Fold kw taps + stride-2 column selection into one (W*Cin, Wo*Cout) matrix.

    wgt_tap: (k, Cin, Cout) weights for one fixed kernel row.
    W2[w*Cin+ci, wo*Cout+co] = sum_j [w == STRIDE*wo + j] * wgt_tap[j, ci, co]
    NOTE: fine at these toy widths; for large W restructure to per-tap
    (Cin, Cout) weights + in-VMEM strided gather (see header scaling notes).
    """
    k = wgt_tap.shape[0]
    cin, cout = wgt_tap.shape[1], wgt_tap.shape[2]
    selw = np.zeros((k, w_in, w_out), np.float32)
    for j in range(k):
        for wo in range(w_out):
            selw[j, STRIDE * wo + j, wo] = 1.0
    folded = jnp.einsum('jwv,jcd->wcvd', jnp.asarray(selw), wgt_tap)
    return folded.reshape(w_in * cin, w_out * cout)


def _bn_projectors(w_out, cout):
    """Factored per-channel column-average projector P = A @ B (both f32).

    A: (Wo*C, C) = kron(ones(Wo,1)/Wo, I_C);  B: (C, Wo*C) = kron(ones(1,Wo), I_C).
    """
    eye = np.eye(cout, dtype=np.float32)
    a = np.kron(np.ones((w_out, 1), np.float32) / w_out, eye)
    b = np.kron(np.ones((1, w_out), np.float32), eye)
    return jnp.asarray(a), jnp.asarray(b)


def init_params(key, channels=3, hidden_dim=16, k=KSIZE):
    """Synthetic parameters matching Critic.__init__ layer shapes.

    Weights stored as (kh, kw, Cin, Cout); biases as (Cout,).
    """
    layer_dims = [
        (channels, hidden_dim),
        (hidden_dim, hidden_dim * 2),
        (hidden_dim * 2, 1),
    ]
    params = []
    for idx, (cin, cout) in enumerate(layer_dims):
        kw_key, kb_key = jax.random.split(jax.random.fold_in(key, idx))
        w = jax.random.normal(kw_key, (k, k, cin, cout), jnp.float32) * 0.05
        b = jax.random.normal(kb_key, (cout,), jnp.float32) * 0.05
        params.append((w, b))
    return params


def prepare_operands(params, batch, height, width):
    """Pack constant kernel operands (bf16 selection / folded weights, f32 BN mats)."""
    ops = []
    h, w = height, width
    n_layers = len(params)
    for idx, (wgt, bias) in enumerate(params):
        ho, wo = _conv_out(h), _conv_out(w)
        cout = wgt.shape[3]
        sel = jnp.stack([_row_select(batch, h, ho, i) for i in range(KSIZE)])
        w2 = jnp.stack([_fold_weight(wgt[i], w, wo) for i in range(KSIZE)])
        sel = sel.astype(jnp.bfloat16)    # exact 0/1
        w2 = w2.astype(jnp.bfloat16)      # halves the dominant DMA bytes
        if idx < n_layers - 1:
            # Conv bias dropped: exactly cancelled by train-mode BN mean sub.
            pa, pb = _bn_projectors(wo, cout)          # f32 (1/Wo not bf16-exact)
            ops.extend([sel, w2, pa, pb])
        else:
            b_bcast = jnp.tile(bias.reshape(1, cout), (1, wo)).astype(jnp.float32)
            ops.extend([sel, w2, b_bcast])
        h, w = ho, wo
    out_2d_shape = (batch * h, w * params[-1][0].shape[3])
    return ops, out_2d_shape


# ---------------------------------------------------------------------------
# Forward pass (single fused pallas_call).
# ---------------------------------------------------------------------------
def critic_forward(image_nchw, packed):
    ops, out_2d_shape = packed
    n, c, h, w = image_nchw.shape
    # NCHW -> lane-dense (N*H, W*C) activation layout (tiny one-time glue),
    # shipped in bf16 (halves the input DMA; conv accumulates in f32).
    x2d = jnp.transpose(image_nchw, (0, 2, 3, 1)).astype(jnp.bfloat16)
    x2d = x2d.reshape(n * h, w * c)

    n_in = 1 + len(ops)
    fused = pl.pallas_call(
        _critic_kernel,
        out_shape=jax.ShapeDtypeStruct(out_2d_shape, jnp.float32),
        in_specs=[pl.BlockSpec(memory_space=pltpu.MemorySpace.VMEM)] * n_in,
        out_specs=pl.BlockSpec(memory_space=pltpu.MemorySpace.VMEM),
        compiler_params=pltpu.CompilerParams(vmem_limit_bytes=16 * 1024 * 1024),
    )(x2d, *ops)

    # (N*Ho, Wo*1) row-major == NCHW (N, 1, Ho, Wo).view(N, -1)
    return fused.reshape(n, -1)


# ---------------------------------------------------------------------------
# Pure-JAX reference (sanity check against the PyTorch semantics).
# ---------------------------------------------------------------------------
def reference_forward(image_nchw, params):
    x = image_nchw.astype(jnp.float32)
    n_layers = len(params)
    for idx, (wgt, bias) in enumerate(params):
        x = jax.lax.conv_general_dilated(
            x, wgt, window_strides=(STRIDE, STRIDE), padding='VALID',
            dimension_numbers=('NCHW', 'HWIO', 'NCHW'))
        x = x + bias.reshape(1, -1, 1, 1)
        if idx < n_layers - 1:
            mean = jnp.mean(x, axis=(0, 2, 3), keepdims=True)
            var = jnp.mean(jnp.square(x - mean), axis=(0, 2, 3), keepdims=True)
            x = (x - mean) * jax.lax.rsqrt(var + BN_EPS)
            x = jnp.where(x >= 0.0, x, LEAKY_SLOPE * x)
    return x.reshape(x.shape[0], -1)


if __name__ == "__main__":
    key = jax.random.PRNGKey(0)
    k_img, k_params = jax.random.split(key)

    # Small shapes: batch=2, channels=3, 32x32 spatial, hidden_dim=16.
    image = jax.random.normal(k_img, (2, 3, 32, 32), jnp.float32)
    params = init_params(k_params, channels=3, hidden_dim=16)

    packed = prepare_operands(params, batch=2, height=32, width=32)
    out = critic_forward(image, packed)
    out = jax.block_until_ready(out)

    # 32 -> 15 -> 6 -> 2 spatial; final conv has 1 channel -> (2, 4).
    assert out.shape == (2, 4), out.shape

    ref = jax.block_until_ready(reference_forward(image, params))
    max_err = float(jnp.max(jnp.abs(out - ref)))
    assert jnp.allclose(out, ref, rtol=5e-2, atol=5e-2), max_err

    print("KERNEL_OK")
</pallas_src>

<mosaic_0001>
module attributes {stable_mosaic.version = 11 : i64} {
  func.func @_critic_kernel(%arg0: memref<64x96xbf16, #tpu.memory_space<vmem>>, %arg1: memref<4x30x64xbf16, #tpu.memory_space<vmem>>, %arg2: memref<4x96x240xbf16, #tpu.memory_space<vmem>>, %arg3: memref<240x16xf32, #tpu.memory_space<vmem>>, %arg4: memref<16x240xf32, #tpu.memory_space<vmem>>, %arg5: memref<4x12x30xbf16, #tpu.memory_space<vmem>>, %arg6: memref<4x240x192xbf16, #tpu.memory_space<vmem>>, %arg7: memref<192x32xf32, #tpu.memory_space<vmem>>, %arg8: memref<32x192xf32, #tpu.memory_space<vmem>>, %arg9: memref<4x4x12xbf16, #tpu.memory_space<vmem>>, %arg10: memref<4x192x2xbf16, #tpu.memory_space<vmem>>, %arg11: memref<1x2xf32, #tpu.memory_space<vmem>>, %arg12: memref<4x2xf32, #tpu.memory_space<vmem>>) attributes {dimension_semantics = [], scalar_prefetch = 0 : i64, scratch_operands = 0 : i64, tpu.core_type = #tpu.core_type<tc>} {
    %c0 = arith.constant 0 : index
    %c0_0 = arith.constant 0 : index
    %0 = vector.load %arg0[%c0, %c0_0] : memref<64x96xbf16, #tpu.memory_space<vmem>>, vector<64x96xbf16>
    %c0_1 = arith.constant 0 : index
    %c0_2 = arith.constant 0 : index
    %c0_3 = arith.constant 0 : index
    %1 = vector.load %arg1[%c0_1, %c0_2, %c0_3] : memref<4x30x64xbf16, #tpu.memory_space<vmem>>, vector<1x30x64xbf16>
    %2 = vector.shape_cast %1 : vector<1x30x64xbf16> to vector<30x64xbf16>
    %cst = arith.constant dense<0.000000e+00> : vector<30x96xf32>
    %3 = tpu.matmul %2, %0, %cst {dimension_numbers = #tpu.dot_dimension_numbers<[1], [0], [0], [1], [0, 0, 1, 1], [], []>} : vector<30x64xbf16>, vector<64x96xbf16>, vector<30x96xf32> -> vector<30x96xf32>
    %4 = arith.truncf %3 : vector<30x96xf32> to vector<30x96xbf16>
    %c0_4 = arith.constant 0 : index
    %c0_5 = arith.constant 0 : index
    %c0_6 = arith.constant 0 : index
    %5 = vector.load %arg2[%c0_4, %c0_5, %c0_6] : memref<4x96x240xbf16, #tpu.memory_space<vmem>>, vector<1x96x240xbf16>
    %6 = vector.shape_cast %5 : vector<1x96x240xbf16> to vector<96x240xbf16>
    %cst_7 = arith.constant dense<0.000000e+00> : vector<30x240xf32>
    %7 = tpu.matmul %4, %6, %cst_7 {dimension_numbers = #tpu.dot_dimension_numbers<[1], [0], [0], [1], [0, 0, 1, 1], [], []>} : vector<30x96xbf16>, vector<96x240xbf16>, vector<30x240xf32> -> vector<30x240xf32>
    %c1 = arith.constant 1 : index
    %c0_8 = arith.constant 0 : index
    %c0_9 = arith.constant 0 : index
    %8 = vector.load %arg1[%c1, %c0_8, %c0_9] : memref<4x30x64xbf16, #tpu.memory_space<vmem>>, vector<1x30x64xbf16>
    %9 = vector.shape_cast %8 : vector<1x30x64xbf16> to vector<30x64xbf16>
    %cst_10 = arith.constant dense<0.000000e+00> : vector<30x96xf32>
    %10 = tpu.matmul %9, %0, %cst_10 {dimension_numbers = #tpu.dot_dimension_numbers<[1], [0], [0], [1], [0, 0, 1, 1], [], []>} : vector<30x64xbf16>, vector<64x96xbf16>, vector<30x96xf32> -> vector<30x96xf32>
    %11 = arith.truncf %10 : vector<30x96xf32> to vector<30x96xbf16>
    %c1_11 = arith.constant 1 : index
    %c0_12 = arith.constant 0 : index
    %c0_13 = arith.constant 0 : index
    %12 = vector.load %arg2[%c1_11, %c0_12, %c0_13] : memref<4x96x240xbf16, #tpu.memory_space<vmem>>, vector<1x96x240xbf16>
    %13 = vector.shape_cast %12 : vector<1x96x240xbf16> to vector<96x240xbf16>
    %cst_14 = arith.constant dense<0.000000e+00> : vector<30x240xf32>
    %14 = tpu.matmul %11, %13, %cst_14 {dimension_numbers = #tpu.dot_dimension_numbers<[1], [0], [0], [1], [0, 0, 1, 1], [], []>} : vector<30x96xbf16>, vector<96x240xbf16>, vector<30x240xf32> -> vector<30x240xf32>
    %15 = arith.addf %7, %14 : vector<30x240xf32>
    %c2 = arith.constant 2 : index
    %c0_15 = arith.constant 0 : index
    %c0_16 = arith.constant 0 : index
    %16 = vector.load %arg1[%c2, %c0_15, %c0_16] : memref<4x30x64xbf16, #tpu.memory_space<vmem>>, vector<1x30x64xbf16>
    %17 = vector.shape_cast %16 : vector<1x30x64xbf16> to vector<30x64xbf16>
    %cst_17 = arith.constant dense<0.000000e+00> : vector<30x96xf32>
    %18 = tpu.matmul %17, %0, %cst_17 {dimension_numbers = #tpu.dot_dimension_numbers<[1], [0], [0], [1], [0, 0, 1, 1], [], []>} : vector<30x64xbf16>, vector<64x96xbf16>, vector<30x96xf32> -> vector<30x96xf32>
    %19 = arith.truncf %18 : vector<30x96xf32> to vector<30x96xbf16>
    %c2_18 = arith.constant 2 : index
    %c0_19 = arith.constant 0 : index
    %c0_20 = arith.constant 0 : index
    %20 = vector.load %arg2[%c2_18, %c0_19, %c0_20] : memref<4x96x240xbf16, #tpu.memory_space<vmem>>, vector<1x96x240xbf16>
    %21 = vector.shape_cast %20 : vector<1x96x240xbf16> to vector<96x240xbf16>
    %cst_21 = arith.constant dense<0.000000e+00> : vector<30x240xf32>
    %22 = tpu.matmul %19, %21, %cst_21 {dimension_numbers = #tpu.dot_dimension_numbers<[1], [0], [0], [1], [0, 0, 1, 1], [], []>} : vector<30x96xbf16>, vector<96x240xbf16>, vector<30x240xf32> -> vector<30x240xf32>
    %23 = arith.addf %15, %22 : vector<30x240xf32>
    %c3 = arith.constant 3 : index
    %c0_22 = arith.constant 0 : index
    %c0_23 = arith.constant 0 : index
    %24 = vector.load %arg1[%c3, %c0_22, %c0_23] : memref<4x30x64xbf16, #tpu.memory_space<vmem>>, vector<1x30x64xbf16>
    %25 = vector.shape_cast %24 : vector<1x30x64xbf16> to vector<30x64xbf16>
    %cst_24 = arith.constant dense<0.000000e+00> : vector<30x96xf32>
    %26 = tpu.matmul %25, %0, %cst_24 {dimension_numbers = #tpu.dot_dimension_numbers<[1], [0], [0], [1], [0, 0, 1, 1], [], []>} : vector<30x64xbf16>, vector<64x96xbf16>, vector<30x96xf32> -> vector<30x96xf32>
    %27 = arith.truncf %26 : vector<30x96xf32> to vector<30x96xbf16>
    %c3_25 = arith.constant 3 : index
    %c0_26 = arith.constant 0 : index
    %c0_27 = arith.constant 0 : index
    %28 = vector.load %arg2[%c3_25, %c0_26, %c0_27] : memref<4x96x240xbf16, #tpu.memory_space<vmem>>, vector<1x96x240xbf16>
    %29 = vector.shape_cast %28 : vector<1x96x240xbf16> to vector<96x240xbf16>
    %cst_28 = arith.constant dense<0.000000e+00> : vector<30x240xf32>
    %30 = tpu.matmul %27, %29, %cst_28 {dimension_numbers = #tpu.dot_dimension_numbers<[1], [0], [0], [1], [0, 0, 1, 1], [], []>} : vector<30x96xbf16>, vector<96x240xbf16>, vector<30x240xf32> -> vector<30x240xf32>
    %31 = arith.addf %23, %30 : vector<30x240xf32>
    %c0_29 = arith.constant 0 : index
    %c0_30 = arith.constant 0 : index
    %32 = vector.load %arg3[%c0_29, %c0_30] : memref<240x16xf32, #tpu.memory_space<vmem>>, vector<240x16xf32>
    %c0_31 = arith.constant 0 : index
    %c0_32 = arith.constant 0 : index
    %33 = vector.load %arg4[%c0_31, %c0_32] : memref<16x240xf32, #tpu.memory_space<vmem>>, vector<16x240xf32>
    %cst_33 = arith.constant dense<0.000000e+00> : vector<240xf32>
    %34 = vector.multi_reduction <add>, %31, %cst_33 [0] : vector<30x240xf32> to vector<240xf32>
    %35 = vector.shape_cast %34 : vector<240xf32> to vector<1x240xf32>
    %cst_34 = arith.constant 3.000000e+01 : f32
    %36 = vector.broadcast %cst_34 : f32 to vector<1x240xf32>
    %37 = arith.divf %35, %36 : vector<1x240xf32>
    %cst_35 = arith.constant dense<0.000000e+00> : vector<1x16xf32>
    %38 = tpu.matmul %37, %32, %cst_35 {dimension_numbers = #tpu.dot_dimension_numbers<[1], [0], [0], [1], [0, 0, 1, 1], [], []>} : vector<1x240xf32>, vector<240x16xf32>, vector<1x16xf32> -> vector<1x16xf32>
    %cst_36 = arith.constant dense<0.000000e+00> : vector<1x240xf32>
    %39 = tpu.matmul %38, %33, %cst_36 {dimension_numbers = #tpu.dot_dimension_numbers<[1], [0], [0], [1], [0, 0, 1, 1], [], []>} : vector<1x16xf32>, vector<16x240xf32>, vector<1x240xf32> -> vector<1x240xf32>
    %40 = vector.broadcast %39 : vector<1x240xf32> to vector<30x240xf32>
    %41 = arith.subf %31, %40 : vector<30x240xf32>
    %42 = arith.mulf %41, %41 : vector<30x240xf32>
    %cst_37 = arith.constant dense<0.000000e+00> : vector<240xf32>
    %43 = vector.multi_reduction <add>, %42, %cst_37 [0] : vector<30x240xf32> to vector<240xf32>
    %44 = vector.shape_cast %43 : vector<240xf32> to vector<1x240xf32>
    %cst_38 = arith.constant 3.000000e+01 : f32
    %45 = vector.broadcast %cst_38 : f32 to vector<1x240xf32>
    %46 = arith.divf %44, %45 : vector<1x240xf32>
    %cst_39 = arith.constant dense<0.000000e+00> : vector<1x16xf32>
    %47 = tpu.matmul %46, %32, %cst_39 {dimension_numbers = #tpu.dot_dimension_numbers<[1], [0], [0], [1], [0, 0, 1, 1], [], []>} : vector<1x240xf32>, vector<240x16xf32>, vector<1x16xf32> -> vector<1x16xf32>
    %cst_40 = arith.constant dense<0.000000e+00> : vector<1x240xf32>
    %48 = tpu.matmul %47, %33, %cst_40 {dimension_numbers = #tpu.dot_dimension_numbers<[1], [0], [0], [1], [0, 0, 1, 1], [], []>} : vector<1x16xf32>, vector<16x240xf32>, vector<1x240xf32> -> vector<1x240xf32>
    %cst_41 = arith.constant 9.99999974E-6 : f32
    %49 = vector.broadcast %cst_41 : f32 to vector<1x240xf32>
    %50 = arith.addf %48, %49 : vector<1x240xf32>
    %51 = math.rsqrt %50 : vector<1x240xf32>
    %52 = vector.broadcast %51 : vector<1x240xf32> to vector<30x240xf32>
    %53 = arith.mulf %41, %52 : vector<30x240xf32>
    %cst_42 = arith.constant 0.000000e+00 : f32
    %54 = vector.broadcast %cst_42 : f32 to vector<30x240xf32>
    %55 = arith.cmpf oge, %53, %54 : vector<30x240xf32>
    %cst_43 = arith.constant 2.000000e-01 : f32
    %56 = vector.broadcast %cst_43 : f32 to vector<30x240xf32>
    %57 = arith.mulf %56, %53 : vector<30x240xf32>
    %58 = arith.select %55, %53, %57 : vector<30x240xi1>, vector<30x240xf32>
    %59 = arith.truncf %58 : vector<30x240xf32> to vector<30x240xbf16>
    %c0_44 = arith.constant 0 : index
    %c0_45 = arith.constant 0 : index
    %c0_46 = arith.constant 0 : index
    %60 = vector.load %arg5[%c0_44, %c0_45, %c0_46] : memref<4x12x30xbf16, #tpu.memory_space<vmem>>, vector<1x12x30xbf16>
    %61 = vector.shape_cast %60 : vector<1x12x30xbf16> to vector<12x30xbf16>
    %cst_47 = arith.constant dense<0.000000e+00> : vector<12x240xf32>
    %62 = tpu.matmul %61, %59, %cst_47 {dimension_numbers = #tpu.dot_dimension_numbers<[1], [0], [0], [1], [0, 0, 1, 1], [], []>} : vector<12x30xbf16>, vector<30x240xbf16>, vector<12x240xf32> -> vector<12x240xf32>
    %63 = arith.truncf %62 : vector<12x240xf32> to vector<12x240xbf16>
    %c0_48 = arith.constant 0 : index
    %c0_49 = arith.constant 0 : index
    %c0_50 = arith.constant 0 : index
    %64 = vector.load %arg6[%c0_48, %c0_49, %c0_50] : memref<4x240x192xbf16, #tpu.memory_space<vmem>>, vector<1x240x192xbf16>
    %65 = vector.shape_cast %64 : vector<1x240x192xbf16> to vector<240x192xbf16>
    %cst_51 = arith.constant dense<0.000000e+00> : vector<12x192xf32>
    %66 = tpu.matmul %63, %65, %cst_51 {dimension_numbers = #tpu.dot_dimension_numbers<[1], [0], [0], [1], [0, 0, 1, 1], [], []>} : vector<12x240xbf16>, vector<240x192xbf16>, vector<12x192xf32> -> vector<12x192xf32>
    %c1_52 = arith.constant 1 : index
    %c0_53 = arith.constant 0 : index
    %c0_54 = arith.constant 0 : index
    %67 = vector.load %arg5[%c1_52, %c0_53, %c0_54] : memref<4x12x30xbf16, #tpu.memory_space<vmem>>, vector<1x12x30xbf16>
    %68 = vector.shape_cast %67 : vector<1x12x30xbf16> to vector<12x30xbf16>
    %cst_55 = arith.constant dense<0.000000e+00> : vector<12x240xf32>
    %69 = tpu.matmul %68, %59, %cst_55 {dimension_numbers = #tpu.dot_dimension_numbers<[1], [0], [0], [1], [0, 0, 1, 1], [], []>} : vector<12x30xbf16>, vector<30x240xbf16>, vector<12x240xf32> -> vector<12x240xf32>
    %70 = arith.truncf %69 : vector<12x240xf32> to vector<12x240xbf16>
    %c1_56 = arith.constant 1 : index
    %c0_57 = arith.constant 0 : index
    %c0_58 = arith.constant 0 : index
    %71 = vector.load %arg6[%c1_56, %c0_57, %c0_58] : memref<4x240x192xbf16, #tpu.memory_space<vmem>>, vector<1x240x192xbf16>
    %72 = vector.shape_cast %71 : vector<1x240x192xbf16> to vector<240x192xbf16>
    %cst_59 = arith.constant dense<0.000000e+00> : vector<12x192xf32>
    %73 = tpu.matmul %70, %72, %cst_59 {dimension_numbers = #tpu.dot_dimension_numbers<[1], [0], [0], [1], [0, 0, 1, 1], [], []>} : vector<12x240xbf16>, vector<240x192xbf16>, vector<12x192xf32> -> vector<12x192xf32>
    %74 = arith.addf %66, %73 : vector<12x192xf32>
    %c2_60 = arith.constant 2 : index
    %c0_61 = arith.constant 0 : index
    %c0_62 = arith.constant 0 : index
    %75 = vector.load %arg5[%c2_60, %c0_61, %c0_62] : memref<4x12x30xbf16, #tpu.memory_space<vmem>>, vector<1x12x30xbf16>
    %76 = vector.shape_cast %75 : vector<1x12x30xbf16> to vector<12x30xbf16>
    %cst_63 = arith.constant dense<0.000000e+00> : vector<12x240xf32>
    %77 = tpu.matmul %76, %59, %cst_63 {dimension_numbers = #tpu.dot_dimension_numbers<[1], [0], [0], [1], [0, 0, 1, 1], [], []>} : vector<12x30xbf16>, vector<30x240xbf16>, vector<12x240xf32> -> vector<12x240xf32>
    %78 = arith.truncf %77 : vector<12x240xf32> to vector<12x240xbf16>
    %c2_64 = arith.constant 2 : index
    %c0_65 = arith.constant 0 : index
    %c0_66 = arith.constant 0 : index
    %79 = vector.load %arg6[%c2_64, %c0_65, %c0_66] : memref<4x240x192xbf16, #tpu.memory_space<vmem>>, vector<1x240x192xbf16>
    %80 = vector.shape_cast %79 : vector<1x240x192xbf16> to vector<240x192xbf16>
    %cst_67 = arith.constant dense<0.000000e+00> : vector<12x192xf32>
    %81 = tpu.matmul %78, %80, %cst_67 {dimension_numbers = #tpu.dot_dimension_numbers<[1], [0], [0], [1], [0, 0, 1, 1], [], []>} : vector<12x240xbf16>, vector<240x192xbf16>, vector<12x192xf32> -> vector<12x192xf32>
    %82 = arith.addf %74, %81 : vector<12x192xf32>
    %c3_68 = arith.constant 3 : index
    %c0_69 = arith.constant 0 : index
    %c0_70 = arith.constant 0 : index
    %83 = vector.load %arg5[%c3_68, %c0_69, %c0_70] : memref<4x12x30xbf16, #tpu.memory_space<vmem>>, vector<1x12x30xbf16>
    %84 = vector.shape_cast %83 : vector<1x12x30xbf16> to vector<12x30xbf16>
    %cst_71 = arith.constant dense<0.000000e+00> : vector<12x240xf32>
    %85 = tpu.matmul %84, %59, %cst_71 {dimension_numbers = #tpu.dot_dimension_numbers<[1], [0], [0], [1], [0, 0, 1, 1], [], []>} : vector<12x30xbf16>, vector<30x240xbf16>, vector<12x240xf32> -> vector<12x240xf32>
    %86 = arith.truncf %85 : vector<12x240xf32> to vector<12x240xbf16>
    %c3_72 = arith.constant 3 : index
    %c0_73 = arith.constant 0 : index
    %c0_74 = arith.constant 0 : index
    %87 = vector.load %arg6[%c3_72, %c0_73, %c0_74] : memref<4x240x192xbf16, #tpu.memory_space<vmem>>, vector<1x240x192xbf16>
    %88 = vector.shape_cast %87 : vector<1x240x192xbf16> to vector<240x192xbf16>
    %cst_75 = arith.constant dense<0.000000e+00> : vector<12x192xf32>
    %89 = tpu.matmul %86, %88, %cst_75 {dimension_numbers = #tpu.dot_dimension_numbers<[1], [0], [0], [1], [0, 0, 1, 1], [], []>} : vector<12x240xbf16>, vector<240x192xbf16>, vector<12x192xf32> -> vector<12x192xf32>
    %90 = arith.addf %82, %89 : vector<12x192xf32>
    %c0_76 = arith.constant 0 : index
    %c0_77 = arith.constant 0 : index
    %91 = vector.load %arg7[%c0_76, %c0_77] : memref<192x32xf32, #tpu.memory_space<vmem>>, vector<192x32xf32>
    %c0_78 = arith.constant 0 : index
    %c0_79 = arith.constant 0 : index
    %92 = vector.load %arg8[%c0_78, %c0_79] : memref<32x192xf32, #tpu.memory_space<vmem>>, vector<32x192xf32>
    %cst_80 = arith.constant dense<0.000000e+00> : vector<192xf32>
    %93 = vector.multi_reduction <add>, %90, %cst_80 [0] : vector<12x192xf32> to vector<192xf32>
    %94 = vector.shape_cast %93 : vector<192xf32> to vector<1x192xf32>
    %cst_81 = arith.constant 1.200000e+01 : f32
    %95 = vector.broadcast %cst_81 : f32 to vector<1x192xf32>
    %96 = arith.divf %94, %95 : vector<1x192xf32>
    %cst_82 = arith.constant dense<0.000000e+00> : vector<1x32xf32>
    %97 = tpu.matmul %96, %91, %cst_82 {dimension_numbers = #tpu.dot_dimension_numbers<[1], [0], [0], [1], [0, 0, 1, 1], [], []>} : vector<1x192xf32>, vector<192x32xf32>, vector<1x32xf32> -> vector<1x32xf32>
    %cst_83 = arith.constant dense<0.000000e+00> : vector<1x192xf32>
    %98 = tpu.matmul %97, %92, %cst_83 {dimension_numbers = #tpu.dot_dimension_numbers<[1], [0], [0], [1], [0, 0, 1, 1], [], []>} : vector<1x32xf32>, vector<32x192xf32>, vector<1x192xf32> -> vector<1x192xf32>
    %99 = vector.broadcast %98 : vector<1x192xf32> to vector<12x192xf32>
    %100 = arith.subf %90, %99 : vector<12x192xf32>
    %101 = arith.mulf %100, %100 : vector<12x192xf32>
    %cst_84 = arith.constant dense<0.000000e+00> : vector<192xf32>
    %102 = vector.multi_reduction <add>, %101, %cst_84 [0] : vector<12x192xf32> to vector<192xf32>
    %103 = vector.shape_cast %102 : vector<192xf32> to vector<1x192xf32>
    %cst_85 = arith.constant 1.200000e+01 : f32
    %104 = vector.broadcast %cst_85 : f32 to vector<1x192xf32>
    %105 = arith.divf %103, %104 : vector<1x192xf32>
    %cst_86 = arith.constant dense<0.000000e+00> : vector<1x32xf32>
    %106 = tpu.matmul %105, %91, %cst_86 {dimension_numbers = #tpu.dot_dimension_numbers<[1], [0], [0], [1], [0, 0, 1, 1], [], []>} : vector<1x192xf32>, vector<192x32xf32>, vector<1x32xf32> -> vector<1x32xf32>
    %cst_87 = arith.constant dense<0.000000e+00> : vector<1x192xf32>
    %107 = tpu.matmul %106, %92, %cst_87 {dimension_numbers = #tpu.dot_dimension_numbers<[1], [0], [0], [1], [0, 0, 1, 1], [], []>} : vector<1x32xf32>, vector<32x192xf32>, vector<1x192xf32> -> vector<1x192xf32>
    %cst_88 = arith.constant 9.99999974E-6 : f32
    %108 = vector.broadcast %cst_88 : f32 to vector<1x192xf32>
    %109 = arith.addf %107, %108 : vector<1x192xf32>
    %110 = math.rsqrt %109 : vector<1x192xf32>
    %111 = vector.broadcast %110 : vector<1x192xf32> to vector<12x192xf32>
    %112 = arith.mulf %100, %111 : vector<12x192xf32>
    %cst_89 = arith.constant 0.000000e+00 : f32
    %113 = vector.broadcast %cst_89 : f32 to vector<12x192xf32>
    %114 = arith.cmpf oge, %112, %113 : vector<12x192xf32>
    %cst_90 = arith.constant 2.000000e-01 : f32
    %115 = vector.broadcast %cst_90 : f32 to vector<12x192xf32>
    %116 = arith.mulf %115, %112 : vector<12x192xf32>
    %117 = arith.select %114, %112, %116 : vector<12x192xi1>, vector<12x192xf32>
    %118 = arith.truncf %117 : vector<12x192xf32> to vector<12x192xbf16>
    %c0_91 = arith.constant 0 : index
    %c0_92 = arith.constant 0 : index
    %c0_93 = arith.constant 0 : index
    %119 = vector.load %arg9[%c0_91, %c0_92, %c0_93] : memref<4x4x12xbf16, #tpu.memory_space<vmem>>, vector<1x4x12xbf16>
    %120 = vector.shape_cast %119 : vector<1x4x12xbf16> to vector<4x12xbf16>
    %cst_94 = arith.constant dense<0.000000e+00> : vector<4x192xf32>
    %121 = tpu.matmul %120, %118, %cst_94 {dimension_numbers = #tpu.dot_dimension_numbers<[1], [0], [0], [1], [0, 0, 1, 1], [], []>} : vector<4x12xbf16>, vector<12x192xbf16>, vector<4x192xf32> -> vector<4x192xf32>
    %122 = arith.truncf %121 : vector<4x192xf32> to vector<4x192xbf16>
    %c0_95 = arith.constant 0 : index
    %c0_96 = arith.constant 0 : index
    %c0_97 = arith.constant 0 : index
    %123 = vector.load %arg10[%c0_95, %c0_96, %c0_97] : memref<4x192x2xbf16, #tpu.memory_space<vmem>>, vector<1x192x2xbf16>
    %124 = vector.shape_cast %123 : vector<1x192x2xbf16> to vector<192x2xbf16>
    %cst_98 = arith.constant dense<0.000000e+00> : vector<4x2xf32>
    %125 = tpu.matmul %122, %124, %cst_98 {dimension_numbers = #tpu.dot_dimension_numbers<[1], [0], [0], [1], [0, 0, 1, 1], [], []>} : vector<4x192xbf16>, vector<192x2xbf16>, vector<4x2xf32> -> vector<4x2xf32>
    %c1_99 = arith.constant 1 : index
    %c0_100 = arith.constant 0 : index
    %c0_101 = arith.constant 0 : index
    %126 = vector.load %arg9[%c1_99, %c0_100, %c0_101] : memref<4x4x12xbf16, #tpu.memory_space<vmem>>, vector<1x4x12xbf16>
    %127 = vector.shape_cast %126 : vector<1x4x12xbf16> to vector<4x12xbf16>
    %cst_102 = arith.constant dense<0.000000e+00> : vector<4x192xf32>
    %128 = tpu.matmul %127, %118, %cst_102 {dimension_numbers = #tpu.dot_dimension_numbers<[1], [0], [0], [1], [0, 0, 1, 1], [], []>} : vector<4x12xbf16>, vector<12x192xbf16>, vector<4x192xf32> -> vector<4x192xf32>
    %129 = arith.truncf %128 : vector<4x192xf32> to vector<4x192xbf16>
    %c1_103 = arith.constant 1 : index
    %c0_104 = arith.constant 0 : index
    %c0_105 = arith.constant 0 : index
    %130 = vector.load %arg10[%c1_103, %c0_104, %c0_105] : memref<4x192x2xbf16, #tpu.memory_space<vmem>>, vector<1x192x2xbf16>
    %131 = vector.shape_cast %130 : vector<1x192x2xbf16> to vector<192x2xbf16>
    %cst_106 = arith.constant dense<0.000000e+00> : vector<4x2xf32>
    %132 = tpu.matmul %129, %131, %cst_106 {dimension_numbers = #tpu.dot_dimension_numbers<[1], [0], [0], [1], [0, 0, 1, 1], [], []>} : vector<4x192xbf16>, vector<192x2xbf16>, vector<4x2xf32> -> vector<4x2xf32>
    %133 = arith.addf %125, %132 : vector<4x2xf32>
    %c2_107 = arith.constant 2 : index
    %c0_108 = arith.constant 0 : index
    %c0_109 = arith.constant 0 : index
    %134 = vector.load %arg9[%c2_107, %c0_108, %c0_109] : memref<4x4x12xbf16, #tpu.memory_space<vmem>>, vector<1x4x12xbf16>
    %135 = vector.shape_cast %134 : vector<1x4x12xbf16> to vector<4x12xbf16>
    %cst_110 = arith.constant dense<0.000000e+00> : vector<4x192xf32>
    %136 = tpu.matmul %135, %118, %cst_110 {dimension_numbers = #tpu.dot_dimension_numbers<[1], [0], [0], [1], [0, 0, 1, 1], [], []>} : vector<4x12xbf16>, vector<12x192xbf16>, vector<4x192xf32> -> vector<4x192xf32>
    %137 = arith.truncf %136 : vector<4x192xf32> to vector<4x192xbf16>
    %c2_111 = arith.constant 2 : index
    %c0_112 = arith.constant 0 : index
    %c0_113 = arith.constant 0 : index
    %138 = vector.load %arg10[%c2_111, %c0_112, %c0_113] : memref<4x192x2xbf16, #tpu.memory_space<vmem>>, vector<1x192x2xbf16>
    %139 = vector.shape_cast %138 : vector<1x192x2xbf16> to vector<192x2xbf16>
    %cst_114 = arith.constant dense<0.000000e+00> : vector<4x2xf32>
    %140 = tpu.matmul %137, %139, %cst_114 {dimension_numbers = #tpu.dot_dimension_numbers<[1], [0], [0], [1], [0, 0, 1, 1], [], []>} : vector<4x192xbf16>, vector<192x2xbf16>, vector<4x2xf32> -> vector<4x2xf32>
    %141 = arith.addf %133, %140 : vector<4x2xf32>
    %c3_115 = arith.constant 3 : index
    %c0_116 = arith.constant 0 : index
    %c0_117 = arith.constant 0 : index
    %142 = vector.load %arg9[%c3_115, %c0_116, %c0_117] : memref<4x4x12xbf16, #tpu.memory_space<vmem>>, vector<1x4x12xbf16>
    %143 = vector.shape_cast %142 : vector<1x4x12xbf16> to vector<4x12xbf16>
    %cst_118 = arith.constant dense<0.000000e+00> : vector<4x192xf32>
    %144 = tpu.matmul %143, %118, %cst_118 {dimension_numbers = #tpu.dot_dimension_numbers<[1], [0], [0], [1], [0, 0, 1, 1], [], []>} : vector<4x12xbf16>, vector<12x192xbf16>, vector<4x192xf32> -> vector<4x192xf32>
    %145 = arith.truncf %144 : vector<4x192xf32> to vector<4x192xbf16>
    %c3_119 = arith.constant 3 : index
    %c0_120 = arith.constant 0 : index
    %c0_121 = arith.constant 0 : index
    %146 = vector.load %arg10[%c3_119, %c0_120, %c0_121] : memref<4x192x2xbf16, #tpu.memory_space<vmem>>, vector<1x192x2xbf16>
    %147 = vector.shape_cast %146 : vector<1x192x2xbf16> to vector<192x2xbf16>
    %cst_122 = arith.constant dense<0.000000e+00> : vector<4x2xf32>
    %148 = tpu.matmul %145, %147, %cst_122 {dimension_numbers = #tpu.dot_dimension_numbers<[1], [0], [0], [1], [0, 0, 1, 1], [], []>} : vector<4x192xbf16>, vector<192x2xbf16>, vector<4x2xf32> -> vector<4x2xf32>
    %149 = arith.addf %141, %148 : vector<4x2xf32>
    %c0_123 = arith.constant 0 : index
    %c0_124 = arith.constant 0 : index
    %150 = vector.load %arg11[%c0_123, %c0_124] : memref<1x2xf32, #tpu.memory_space<vmem>>, vector<1x2xf32>
    %151 = vector.broadcast %150 : vector<1x2xf32> to vector<4x2xf32>
    %152 = arith.addf %149, %151 : vector<4x2xf32>
    %c0_125 = arith.constant 0 : index
    %c0_126 = arith.constant 0 : index
    %153 = vector.load %arg12[%c0_125, %c0_126] : memref<4x2xf32, #tpu.memory_space<vmem>>, vector<4x2xf32>
    tpu.vector_store %arg12[%c0_125, %c0_126], %152 {strides = array<i32>} : memref<4x2xf32, #tpu.memory_space<vmem>>, vector<4x2xf32>,
    return
  }
}

</mosaic_0001>

<bundles_post_ra>
// kernel: tpu_custom_call.1
= control target key start
LH: loop header
LB: loop body
LE: loop exit
PB: predicated region body
PF: predicated region fallthrough
CT: control target
= control target key end

     0   :  { %vm88_vm0 = vcmask 523264   ;;  %v4811_v25 = vmov 0   ;;  %v4812_v26 = vmov 0.0|0.0   ;;  %vm303_vm1 = vcmask 785408   ;;  %s6170_s0 = inlined_call_operand.vmem [shape: bf16[64,96], index: 0, kind: input, shape index: {}]   ;;  %s6171_s1 = inlined_call_operand.vmem [shape: bf16[4,30,64], index: 1, kind: input, shape index: {}]   ;;  %s6172_s2 = inlined_call_operand.vmem [shape: bf16[4,96,240], index: 2, kind: input, shape index: {}]   ;;  %s6173_s3 = inlined_call_operand.vmem [shape: f32[240,16], index: 3, kind: input, shape index: {}]   ;;  %s6174_s4 = inlined_call_operand.vmem [shape: f32[16,240], index: 4, kind: input, shape index: {}]   ;;  %s6175_s5 = inlined_call_operand.vmem [shape: bf16[4,12,30], index: 5, kind: input, shape index: {}]   ;;  %s6176_s6 = inlined_call_operand.vmem [shape: bf16[4,240,192], index: 6, kind: input, shape index: {}]   ;;  %s6177_s7 = inlined_call_operand.vmem [shape: f32[192,32], index: 7, kind: input, shape index: {}]   ;;  %s6178_s8 = inlined_call_operand.vmem [shape: f32[32,192], index: 8, kind: input, shape index: {}]   ;;  %s6179_s10 = inlined_call_operand.vmem [shape: bf16[4,192,2], index: 10, kind: input, shape index: {}]   ;;  %s6180_s9 = inlined_call_operand.vmem [shape: bf16[4,4,12], index: 9, kind: input, shape index: {}]   ;;  %s6181_s11 = inlined_call_operand.vmem [shape: f32[1,2], index: 11, kind: input, shape index: {}]   ;;  %s6182_s12 = inlined_call_operand.vmem [shape: f32[4,2], index: 12, kind: output, shape index: {}]  }
   0x1   :  { %v4487_v0 = vld [vmem:[%s6170_s0] sm:$0xff]   ;;  %v4488_v1 = vld [vmem:[%s6170_s0 + $0x8] sm:$0xff]   ;;  %v4489_v2 = vld [vmem:[%s6170_s0 + $0x10] sm:$0xff]   ;;  %342 = vmatprep.mubr.bf16.mxu0 %v4811_v25  ;;  %vm951_vm2 = vcmask 916480   ;;  %vm942_vm3 = vcmask 1045504   ;;  %vm957_vm4 = vcmask 914432  }
   0x2   :  { %4214 = vmatprep.subr.bf16.mxu1 %v4487_v0  ;;  %v4491_v3 = vld [vmem:[%s6171_s1] sm:$0xff]   ;;  %v4490_v4 = vld [vmem:[%s6170_s0 + $0x18] sm:$0xff]   ;;  %v4492_v5 = vld [vmem:[%s6171_s1 + $0x8] sm:$0x7f]   ;;  %vm1042_vm5 = vcmask 130048   ;;  %vm1370_vm14 = vcmask 1046528  }
   0x3   :  { %4215 = vmatpush3.bf16.msra.mxu1 %v4487_v0  ;;  %4222 = vmatprep.mubr.msk.bf16.mxu1 %vm88_vm0, %v4491_v3  ;;  %v4499_v6 = vld [vmem:[%s6172_s2 + $0x64] ss:$8 sps:$4 sm:$0xff]   ;;  %v4493_v7 = vld [vmem:[%s6171_s1 + $0x10] sm:$0xff]   ;;  %v4501_v8 = vld [vmem:[%s6172_s2 + $0x60] ss:$8 sps:$4 sm:$0xff]   ;;  %vm1366_vm15 = vcmask 244736  }
   0x4   :  { %4216 = vmatprep.subr.bf16.mxu1 %v4488_v1  ;;  %310 = vmatprep.subr.bf16.mxu0 %v4499_v6  ;;  %v4494_v9 = vld [vmem:[%s6171_s1 + $0x18] sm:$0x7f]   ;;  %v4495_v10 = vld [vmem:[%s6171_s1 + $0x20] sm:$0xff]   ;;  %v4496_v11 = vld [vmem:[%s6171_s1 + $0x28] sm:$0x7f]  }
   0x5   :  { %311 = vmatpush1.bf16.msra.mxu0 %v4501_v8  ;;  %v4497_v12 = vld [vmem:[%s6171_s1 + $0x30] sm:$0xff]   ;;  %v4498_v13 = vld [vmem:[%s6171_s1 + $0x38] sm:$0x7f]   ;;  %v4505_v16 = vld [vmem:[%s6172_s2 + $0x84] ss:$8 sps:$4 sm:$0xff]  }
   0x6   :  { %v4502_v14 = vld [vmem:[%s6172_s2 + $0x74] ss:$8 sps:$4 sm:$0xff]   ;;  %v4504_v15 = vld [vmem:[%s6172_s2 + $0x70] ss:$8 sps:$4 sm:$0xff]   ;;  %v4507_v17 = vld [vmem:[%s6172_s2 + $0x80] ss:$8 sps:$4 sm:$0xff]  }
   0x7   :  { %4217 = vmatpush3.bf16.msra.mxu1 %v4488_v1  ;;  %312 = vmatprep.subr.bf16.mxu0 %v4502_v14  ;;  %v4508_v18 = vld [vmem:[%s6172_s2 + $0x94] ss:$8 sps:$4 sm:$0xff]   ;;  %v4510_v19 = vld [vmem:[%s6172_s2 + $0x90] ss:$8 sps:$4 sm:$0xff]   ;;  %v4511_v20 = vld [vmem:[%s6172_s2 + $0xa4] ss:$8 sps:$4 sm:$0xff]  }
   0x8   :  { %4218 = vmatprep.subr.bf16.mxu1 %v4489_v2  ;;  %v4513_v21 = vld [vmem:[%s6172_s2 + $0xa0] ss:$8 sps:$4 sm:$0xff]   ;;  %v4514_v22 = vld [vmem:[%s6172_s2 + $0xb4] ss:$8 sps:$4 sm:$0xff]   ;;  %v4516_v23 = vld [vmem:[%s6172_s2 + $0xb0] ss:$8 sps:$4 sm:$0xff]  }
   0x9   :  { %313 = vmatpush1.bf16.msra.mxu0 %v4504_v15  ;;  %v4519_v24 = vld [vmem:[%s6172_s2 + $0x4] ss:$8 sps:$4 sm:$0xff]   ;;  %v908_v29 = vld [vmem:[%s6173_s3 + $0x10] sm:$0xff]  ;;  %v909_v31 = vld [vmem:[%s6173_s3 + $0x18] sm:$0xff] }
   0xa   :  { %314 = vmatprep.subr.bf16.mxu0 %v4505_v16  ;;  %v906_v27 = vld [vmem:[%s6173_s3] sm:$0xff]  ;;  %v907_v28 = vld [vmem:[%s6173_s3 + $0x8] sm:$0xff]  ;;  %v4979_v32 = vpack.c.bf16 %v909_v31, %v908_v29  ;;  %v912_v36 = vld [vmem:[%s6173_s3 + $0x30] sm:$0xff] }
   0xb   :  { %4219 = vmatpush3.bf16.msra.mxu1 %v4489_v2  ;;  %v4973_v30 = vpack.c.bf16 %v907_v28, %v906_v27  ;;  %v910_v33 = vld [vmem:[%s6173_s3 + $0x20] sm:$0xff]  ;;  %v911_v34 = vld [vmem:[%s6173_s3 + $0x28] sm:$0xff]  ;;  %v913_v37 = vld [vmem:[%s6173_s3 + $0x38] sm:$0xff] }
   0xc   :  { %4220 = vmatprep.subr.bf16.mxu1 %v4490_v4  ;;  %v4989_v35 = vpack.c.bf16 %v911_v34, %v910_v33  ;;  %v4999_v38 = vpack.c.bf16 %v913_v37, %v912_v36  ;;  %v914_v39 = vld [vmem:[%s6173_s3 + $0x40] sm:$0xff]  ;;  %v915_v40 = vld [vmem:[%s6173_s3 + $0x48] sm:$0xff]  ;;  %v916_v42 = vld [vmem:[%s6173_s3 + $0x50] sm:$0xff] }
   0xd   :  { %315 = vmatpush1.bf16.msra.mxu0 %v4507_v17  ;;  %v5009_v41 = vpack.c.bf16 %v915_v40, %v914_v39  ;;  %v917_v43 = vld [vmem:[%s6173_s3 + $0x58] sm:$0xff]  ;;  %v918_v45 = vld [vmem:[%s6173_s3 + $0x60] sm:$0xff]  ;;  %v919_v46 = vld [vmem:[%s6173_s3 + $0x68] sm:$0xff] }
   0xe   :  { %316 = vmatprep.subr.bf16.mxu0 %v4508_v18  ;;  %v5019_v44 = vpack.c.bf16 %v917_v43, %v916_v42  ;;  %v5029_v47 = vpack.c.bf16 %v919_v46, %v918_v45  ;;  %v920_v48 = vld [vmem:[%s6173_s3 + $0x70] sm:$0xff]  ;;  %v921_v49 = vld [vmem:[%s6173_s3 + $0x78] sm:$0xff]  ;;  %v4517_v62 = vld [vmem:[%s6172_s2] ss:$8 sps:$4 sm:$0xff]  }
   0xf   :  { %4221 = vmatpush3.bf16.msra.mxu1 %v4490_v4  ;;  %v5043_v53 = vpack.c.bf16 %v921_v49, %v920_v48  ;;  %v4523_v3 = vld [vmem:[%s6172_s2 + $0x20] ss:$8 sps:$4 sm:$0xff]   ;;  %v4531_v6 = vld [vmem:[%s6172_s2 + $0x44] ss:$8 sps:$4 sm:$0xff]   ;;  %v4532_v15 = vld [vmem:[%s6172_s2 + $0x50] ss:$8 sps:$4 sm:$0xff]  }
  0x10   :  { %4226 = vmatprep.subr.bf16.mxu1 %v4487_v0  ;;  %v4537_v16 = vld [vmem:[%s6172_s2 + $0xc4] ss:$8 sps:$4 sm:$0xff]   ;;  %v4535_v17 = vld [vmem:[%s6172_s2 + $0xc0] ss:$8 sps:$4 sm:$0xff]   ;;  %v4540_v18 = vld [vmem:[%s6172_s2 + $0xd4] ss:$8 sps:$4 sm:$0xff]  }
  0x11   :  { %317 = vmatpush1.bf16.msra.mxu0 %v4510_v19  ;;  %v4538_v19 = vld [vmem:[%s6172_s2 + $0xd0] ss:$8 sps:$4 sm:$0xff]   ;;  %v4546_v29 = vld [vmem:[%s6172_s2 + $0xf4] ss:$8 sps:$4 sm:$0xff]   ;;  %v4549_v34 = vld [vmem:[%s6172_s2 + $0x104] ss:$8 sps:$4 sm:$0xff]  }
  0x12   :  { %4223 = vmatmul.mubr.msk.bf16.vlgmr.msra.gmra.mrb[0].mxu1 %vm88_vm0, %v4492_v5  ;;  %318 = vmatprep.subr.bf16.mxu0 %v4511_v20  ;;  %v4526_v5 = vld [vmem:[%s6172_s2 + $0x30] ss:$8 sps:$4 sm:$0xff]   ;;  %v4543_v20 = vld [vmem:[%s6172_s2 + $0xe4] ss:$8 sps:$4 sm:$0xff]   ;;  %v4547_v36 = vld [vmem:[%s6172_s2 + $0x100] ss:$8 sps:$4 sm:$0xff]  }
  0x13   :  { %4227 = vmatpush3.bf16.msra.mxu1 %v4487_v0  ;;  %4234 = vmatprep.mubr.msk.bf16.mxu1 %vm88_vm0, %v4493_v7  ;;  %v4544_v33 = vld [vmem:[%s6172_s2 + $0xf0] ss:$8 sps:$4 sm:$0xff]   ;;  %v4552_v37 = vld [vmem:[%s6172_s2 + $0x114] ss:$8 sps:$4 sm:$0xff]   ;;  %v4555_v40 = vld [vmem:[%s6172_s2 + $0x124] ss:$8 sps:$4 sm:$0xff]  }
  0x14   :  { %4228 = vmatprep.subr.bf16.mxu1 %v4488_v1  ;;  %v4550_v39 = vld [vmem:[%s6172_s2 + $0x110] ss:$8 sps:$4 sm:$0xff]   ;;  %v4553_v42 = vld [vmem:[%s6172_s2 + $0x120] ss:$8 sps:$4 sm:$0xff]   ;;  %v4558_v43 = vld [vmem:[%s6172_s2 + $0x134] ss:$8 sps:$4 sm:$0xff]  }
  0x15   :  { %319 = vmatpush1.bf16.msra.mxu0 %v4513_v21  ;;  %v4556_v45 = vld [vmem:[%s6172_s2 + $0x130] ss:$8 sps:$4 sm:$0xff]   ;;  %v4561_v46 = vld [vmem:[%s6172_s2 + $0x144] ss:$8 sps:$4 sm:$0xff]   ;;  %v4559_v48 = vld [vmem:[%s6172_s2 + $0x140] ss:$8 sps:$4 sm:$0xff]  }
  0x16   :  { %320 = vmatprep.subr.bf16.mxu0 %v4514_v22  ;;  %v4564_v49 = vld [vmem:[%s6172_s2 + $0x154] ss:$8 sps:$4 sm:$0xff]  }
  0x17   :  { %4229 = vmatpush3.bf16.msra.mxu1 %v4488_v1 }
  0x18   :  { %4230 = vmatprep.subr.bf16.mxu1 %v4489_v2 }
  0x19   :  { %321 = vmatpush1.bf16.msra.mxu0 %v4516_v23 }
  0x1a   :  { %429 = vmatprep.subr.bf16.mxu0 %v4519_v24  ;;  %v4541_v24 = vld [vmem:[%s6172_s2 + $0xe0] ss:$8 sps:$4 sm:$0xff]  }
  0x1b   :  { %4231 = vmatpush3.bf16.msra.mxu1 %v4489_v2 }
  0x1c   :  { %4232 = vmatprep.subr.bf16.mxu1 %v4490_v4 }
  0x1f   :  { %4233 = vmatpush3.bf16.msra.mxu1 %v4490_v4 }
  0x20   :  { %4238 = vmatprep.subr.bf16.mxu1 %v4487_v0 }
  0x22   :  { %4235 = vmatmul.mubr.msk.bf16.vlgmr.msra.gmra.mrb[4].mxu1 %vm88_vm0, %v4494_v9 }
  0x23   :  { %4239 = vmatpush3.bf16.msra.mxu1 %v4487_v0  ;;  %4246 = vmatprep.mubr.msk.bf16.mxu1 %vm88_vm0, %v4495_v10  ;;  %v4529_v10 = vld [vmem:[%s6172_s2 + $0x40] ss:$8 sps:$4 sm:$0xff]  }
  0x24   :  { %4240 = vmatprep.subr.bf16.mxu1 %v4488_v1 }
  0x27   :  { %4241 = vmatpush3.bf16.msra.mxu1 %v4488_v1 }
  0x28   :  { %4242 = vmatprep.subr.bf16.mxu1 %v4489_v2 }
  0x2b   :  { %4243 = vmatpush3.bf16.msra.mxu1 %v4489_v2 }
  0x2c   :  { %4244 = vmatprep.subr.bf16.mxu1 %v4490_v4 }
  0x2f   :  { %4245 = vmatpush3.bf16.msra.mxu1 %v4490_v4 }
  0x30   :  { %4250 = vmatprep.subr.bf16.mxu1 %v4487_v0 }
  0x32   :  { %4247 = vmatmul.mubr.msk.bf16.vlgmr.msra.gmra.mrb[8].mxu1 %vm88_vm0, %v4496_v11 }
  0x33   :  { %4251 = vmatpush3.bf16.msra.mxu1 %v4487_v0  ;;  %4258 = vmatprep.mubr.msk.bf16.mxu1 %vm88_vm0, %v4497_v12  ;;  %v4522_v0 = vld [vmem:[%s6172_s2 + $0x14] ss:$8 sps:$4 sm:$0xff]  }
  0x34   :  { %4252 = vmatprep.subr.bf16.mxu1 %v4488_v1 }
  0x37   :  { %4253 = vmatpush3.bf16.msra.mxu1 %v4488_v1  ;;  %v4520_v1 = vld [vmem:[%s6172_s2 + $0x10] ss:$8 sps:$4 sm:$0xff]  }
  0x38   :  { %4254 = vmatprep.subr.bf16.mxu1 %v4489_v2 }
  0x3b   :  { %4255 = vmatpush3.bf16.msra.mxu1 %v4489_v2  ;;  %v4525_v2 = vld [vmem:[%s6172_s2 + $0x24] ss:$8 sps:$4 sm:$0xff]  }
  0x3c   :  { %4256 = vmatprep.subr.bf16.mxu1 %v4490_v4 }
  0x3f   :  { %4257 = vmatpush3.bf16.msra.mxu1 %v4490_v4  ;;  %v4528_v4 = vld [vmem:[%s6172_s2 + $0x34] ss:$8 sps:$4 sm:$0xff]  }
  0x40   :  { %4262 = vmatprep.subr.bf16.mxu1 %v4812_v26 }
  0x42   :  { %4259 = vmatmul.mubr.msk.bf16.vlgmr.msra.gmra.mrb[12].mxu1 %vm88_vm0, %v4498_v13  ;;  %v4534_v13 = vld [vmem:[%s6172_s2 + $0x54] ss:$8 sps:$4 sm:$0xff]  }
  0x43   :  { %4264 = vmatpush1.bf16.msra.mxu1 %v4973_v30 }
  0x44   :  { %4265 = vmatprep.subr.bf16.mxu1 %v4812_v26 }
  0x47   :  { %4267 = vmatpush1.bf16.msra.mxu1 %v4979_v32 }
  0x48   :  { %4268 = vmatprep.subr.bf16.mxu1 %v4812_v26 }
  0x4b   :  { %4270 = vmatpush1.bf16.msra.mxu1 %v4989_v35 }
  0x4c   :  { %4271 = vmatprep.subr.bf16.mxu1 %v4812_v26 }
  0x4f   :  { %4273 = vmatpush1.bf16.msra.mxu1 %v4999_v38 }
  0x50   :  { %4274 = vmatprep.subr.bf16.mxu1 %v4812_v26 }
  0x53   :  { %4276 = vmatpush1.bf16.msra.mxu1 %v5009_v41 }
  0x54   :  { %4277 = vmatprep.subr.bf16.mxu1 %v4812_v26 }
  0x57   :  { %4279 = vmatpush1.bf16.msra.mxu1 %v5019_v44 }
  0x58   :  { %4280 = vmatprep.subr.bf16.mxu1 %v4812_v26 }
  0x5b   :  { %4282 = vmatpush1.bf16.msra.mxu1 %v5029_v47 }
  0x5c   :  { %4283 = vmatprep.subr.bf16.mxu1 %v4812_v26 }
  0x5f   :  { %4285 = vmatpush1.bf16.msra.mxu1 %v5043_v53 }
  0x60   :  { %4286 = vmatprep.subr.bf16.mxu1 %v4812_v26 }
  0xe5   :  { %v5038_v50 = vpop.f32.mrb[0].mxu1 }
  0xe6   :  { %v129_v51 = vpop.f32.mrb[1].mxu1 }
  0xe7   :  { %v5040_v52 = vpop.f32.mrb[2].mxu1 }
  0xe8   :  { %v145_v54 = vpack.c.bf16 %v5040_v52, %v5038_v50  ;;  %v132_v55 = vpop.f32.mrb[3].mxu1  ;;  %v4562_v50 = vld [vmem:[%s6172_s2 + $0x150] ss:$8 sps:$4 sm:$0xff]   ;;  %v4565_v52 = vld [vmem:[%s6172_s2 + $0x160] ss:$8 sps:$4 sm:$0xff]  }
  0xe9   :  { %v144_v56 = vpack.c.bf16 %v132_v55, %v129_v51  ;;  %v4567_v51 = vld [vmem:[%s6172_s2 + $0x164] ss:$8 sps:$4 sm:$0xff]   ;;  %v4568_v55 = vld [vmem:[%s6172_s2 + $0x170] ss:$8 sps:$4 sm:$0xff]  }
  0xf5   :  { %v4236_v57 = vpop.f32.mrb[4].mxu1 }
  0xf6   :  { %v213_v58 = vpop.f32.mrb[5].mxu1 }
  0xf7   :  { %v4237_v59 = vpop.f32.mrb[6].mxu1 }
  0xf8   :  { %v229_v60 = vpack.c.bf16 %v4237_v59, %v4236_v57  ;;  %v216_v61 = vpop.f32.mrb[7].mxu1  ;;  %v928_v57 = vld [vmem:[%s6173_s3 + $0xb0] sm:$0xff] }
  0xf9   :  { %v228_v63 = vpack.c.bf16 %v216_v61, %v213_v58  ;;  %v929_v58 = vld [vmem:[%s6173_s3 + $0xb8] sm:$0xff]  ;;  %v931_v61 = vld [vmem:[%s6173_s3 + $0xc8] sm:$0xff] }
  0xfa   :  { %v4296_v59 = vpack.c.bf16 %v929_v58, %v928_v57 }
  0xfb   :  { %3730 = vmatmul.mubr.msk.bf16.vlgmr.msra.gmra.mrb[0].mxu0 %vm303_vm1, %v228_v63  ;;  %v932_v63 = vld [vmem:[%s6173_s3 + $0xd0] sm:$0xff] }
  0xfc   :  { %430 = vmatpush1.bf16.msra.mxu0 %v4517_v62  ;;  %352 = vmatprep.mubr.bf16.mxu0 %v4811_v25 }
  0xfd   :  { %431 = vmatprep.subr.bf16.mxu0 %v4522_v0  ;;  %v933_v0 = vld [vmem:[%s6173_s3 + $0xd8] sm:$0xff] }
 0x100   :  { %432 = vmatpush1.bf16.msra.mxu0 %v4520_v1  ;;  %v4302_v1 = vpack.c.bf16 %v933_v0, %v932_v63 }
 0x101   :  { %433 = vmatprep.subr.bf16.mxu0 %v4525_v2  ;;  %v934_v2 = vld [vmem:[%s6173_s3 + $0xe0] sm:$0xff] }
 0x103   :  { %3731 = vmatmul.mubr.msk.bf16.gmra.mrb[4].mxu0 %vm303_vm1, %v229_v60  ;;  %v930_v60 = vld [vmem:[%s6173_s3 + $0xc0] sm:$0xff] }
 0x104   :  { %434 = vmatpush1.bf16.msra.mxu0 %v4523_v3  ;;  %461 = vmatprep.mubr.bf16.mxu0 %v4811_v25  ;;  %v4299_v62 = vpack.c.bf16 %v931_v61, %v930_v60  ;;  %v935_v3 = vld [vmem:[%s6173_s3 + $0xe8] sm:$0xff] }
 0x105   :  { %435 = vmatprep.subr.bf16.mxu0 %v4528_v4  ;;  %v5078_v7 = vpop.f32.mrb[8].mxu1  ;;  %v4305_v4 = vpack.c.bf16 %v935_v3, %v934_v2 }
 0x106   :  { %v537_v8 = vpop.f32.mrb[9].mxu1 }
 0x107   :  { %v4249_v9 = vpop.f32.mrb[10].mxu1 }
 0x108   :  { %436 = vmatpush1.bf16.msra.mxu0 %v4526_v5  ;;  %v553_v11 = vpack.c.bf16 %v4249_v9, %v5078_v7  ;;  %v540_v12 = vpop.f32.mrb[11].mxu1  ;;  %v937_v5 = vld [vmem:[%s6174_s4 + $0x8] sm:$0xff] }
 0x109   :  { %437 = vmatprep.subr.bf16.mxu0 %v4531_v6  ;;  %v552_v14 = vpack.c.bf16 %v540_v12, %v537_v8  ;;  %v939_v6 = vld [vmem:[%s6174_s4 + $0x18] sm:$0xff] }
 0x10a   :  { %v4307_v7 = vpack.c.bf16 %v939_v6, %v937_v5 }
 0x10c   :  { %438 = vmatpush1.bf16.msra.mxu0 %v4529_v10 }
 0x10d   :  { %439 = vmatprep.subr.bf16.mxu0 %v4534_v13 }
 0x110   :  { %440 = vmatpush1.bf16.msra.mxu0 %v4532_v15 }
 0x111   :  { %633 = vmatprep.subr.bf16.mxu0 %v4537_v16 }
 0x113   :  { %3744 = vmatmul.mubr.msk.bf16.vlgmr.msra.gmra.mrb[0].mxu0 %vm303_vm1, %v144_v56 }
 0x114   :  { %634 = vmatpush1.bf16.msra.mxu0 %v4535_v17  ;;  %471 = vmatprep.mubr.bf16.mxu0 %v4811_v25 }
 0x115   :  { %635 = vmatprep.subr.bf16.mxu0 %v4540_v18  ;;  %v4260_v21 = vpop.f32.mrb[12].mxu1 }
 0x116   :  { %v749_v22 = vpop.f32.mrb[13].mxu1 }
 0x117   :  { %v4261_v23 = vpop.f32.mrb[14].mxu1 }
 0x118   :  { %636 = vmatpush1.bf16.msra.mxu0 %v4538_v19  ;;  %v765_v27 = vpack.c.bf16 %v4261_v23, %v4260_v21  ;;  %v752_v28 = vpop.f32.mrb[15].mxu1 }
 0x119   :  { %637 = vmatprep.subr.bf16.mxu0 %v4543_v20  ;;  %v764_v31 = vpack.c.bf16 %v752_v28, %v749_v22 }
 0x11b   :  { %3745 = vmatmul.mubr.msk.bf16.gmra.mrb[4].mxu0 %vm303_vm1, %v145_v54  ;;  %v4570_v54 = vld [vmem:[%s6172_s2 + $0x174] ss:$8 sps:$4 sm:$0xff]  }
 0x11c   :  { %638 = vmatpush1.bf16.msra.mxu0 %v4541_v24  ;;  %665 = vmatprep.mubr.bf16.mxu0 %v4811_v25 }
 0x11d   :  { %639 = vmatprep.subr.bf16.mxu0 %v4546_v29 }
 0x120   :  { %640 = vmatpush1.bf16.msra.mxu0 %v4544_v33 }
 0x121   :  { %641 = vmatprep.subr.bf16.mxu0 %v4549_v34 }
 0x124   :  { %642 = vmatpush1.bf16.msra.mxu0 %v4547_v36 }
 0x125   :  { %643 = vmatprep.subr.bf16.mxu0 %v4552_v37 }
 0x128   :  { %644 = vmatpush1.bf16.msra.mxu0 %v4550_v39 }
 0x129   :  { %845 = vmatprep.subr.bf16.mxu0 %v4555_v40 }
 0x12b   :  { %3778 = vmatmul.mubr.msk.bf16.vlgmr.msra.gmra.mrb[0].mxu0 %vm303_vm1, %v552_v14 }
 0x12c   :  { %846 = vmatpush1.bf16.msra.mxu0 %v4553_v42  ;;  %675 = vmatprep.mubr.bf16.mxu0 %v4811_v25 }
 0x12d   :  { %847 = vmatprep.subr.bf16.mxu0 %v4558_v43 }
 0x130   :  { %848 = vmatpush1.bf16.msra.mxu0 %v4556_v45 }
 0x131   :  { %849 = vmatprep.subr.bf16.mxu0 %v4561_v46  ;;  %v936_v46 = vld [vmem:[%s6174_s4] sm:$0xff] }
 0x133   :  { %3779 = vmatmul.mubr.msk.bf16.gmra.mrb[4].mxu0 %vm303_vm1, %v553_v11 }
 0x134   :  { %850 = vmatpush1.bf16.msra.mxu0 %v4559_v48  ;;  %877 = vmatprep.mubr.bf16.mxu0 %v4811_v25  ;;  %v938_v48 = vld [vmem:[%s6174_s4 + $0x10] sm:$0xff] }
 0x135   :  { %851 = vmatprep.subr.bf16.mxu0 %v4564_v49 }
 0x138   :  { %852 = vmatpush1.bf16.msra.mxu0 %v4562_v50 }
 0x139   :  { %853 = vmatprep.subr.bf16.mxu0 %v4567_v51  ;;  %v4309_v51 = vpack.c.bf16 %v938_v48, %v936_v46 }
 0x13c   :  { %854 = vmatpush1.bf16.msra.mxu0 %v4565_v52 }
 0x13d   :  { %855 = vmatprep.subr.bf16.mxu0 %v4570_v54  ;;  %v4813_v54 = vmov 0.0  }
 0x140   :  { %856 = vmatpush1.bf16.msra.mxu0 %v4568_v55 }
 0x141   :  { %4311 = vmatprep.subr.bf16.mxu0 %v4812_v26 }
 0x143   :  { %3812 = vmatmul.mubr.msk.bf16.vlgmr.msra.gmra.mrb[0].mxu0 %vm303_vm1, %v764_v31 }
 0x144   :  { %887 = vmatprep.mubr.bf16.mxu0 %v4811_v25  ;;  %4313 = vmatpush1.bf16.msra.mxu0 %v4973_v30  ;;  %v922_v30 = vld [vmem:[%s6173_s3 + $0x80] sm:$0xff] }
 0x145   :  { %4314 = vmatprep.subr.bf16.mxu0 %v4812_v26 }
 0x148   :  { %4316 = vmatpush1.bf16.msra.mxu0 %v4979_v32  ;;  %v923_v32 = vld [vmem:[%s6173_s3 + $0x88] sm:$0xff] }
 0x149   :  { %4317 = vmatprep.subr.bf16.mxu0 %v4812_v26 }
 0x14b   :  { %3813 = vmatmul.mubr.msk.bf16.gmra.mrb[4].mxu0 %vm303_vm1, %v765_v27  ;;  %vm2537_vm1 = vcmask 1043456  }
 0x14c   :  { %4319 = vmatpush1.bf16.msra.mxu0 %v4989_v35  ;;  %v4287_v35 = vpack.c.bf16 %v923_v32, %v922_v30  ;;  %v1117_v32 = vlaneseq }
 0x14d   :  { %4320 = vmatprep.subr.bf16.mxu0 %v4812_v26 }
 0x14e   :  { %4288 = vmatpush1.bf16.msra.mxu1 %v4287_v35 }
 0x14f   :  { %4289 = vmatprep.subr.bf16.mxu1 %v4812_v26 }
 0x150   :  { %4322 = vmatpush1.bf16.msra.mxu0 %v4999_v38  ;;  %v924_v38 = vld [vmem:[%s6173_s3 + $0x90] sm:$0xff] }
 0x151   :  { %4323 = vmatprep.subr.bf16.mxu0 %v4812_v26 }
 0x154   :  { %4325 = vmatpush1.bf16.msra.mxu0 %v5009_v41  ;;  %v925_v41 = vld [vmem:[%s6173_s3 + $0x98] sm:$0xff] }
 0x155   :  { %4326 = vmatprep.subr.bf16.mxu0 %v4812_v26 }
 0x158   :  { %4328 = vmatpush1.bf16.msra.mxu0 %v5019_v44  ;;  %v4290_v44 = vpack.c.bf16 %v925_v41, %v924_v38 }
 0x159   :  { %4329 = vmatprep.subr.bf16.mxu0 %v4812_v26 }
 0x15a   :  { %4291 = vmatpush1.bf16.msra.mxu1 %v4290_v44 }
 0x15b   :  { %4292 = vmatprep.subr.bf16.mxu1 %v4812_v26 }
 0x15c   :  { %4331 = vmatpush1.bf16.msra.mxu0 %v5029_v47  ;;  %v926_v47 = vld [vmem:[%s6173_s3 + $0xa0] sm:$0xff] }
 0x15d   :  { %4332 = vmatprep.subr.bf16.mxu0 %v4812_v26 }
 0x160   :  { %4334 = vmatpush1.bf16.msra.mxu0 %v5043_v53  ;;  %v927_v53 = vld [vmem:[%s6173_s3 + $0xa8] sm:$0xff] }
 0x161   :  { %4335 = vmatprep.subr.bf16.mxu0 %v4812_v26  ;;  %v4293_v56 = vpack.c.bf16 %v927_v53, %v926_v47 }
 0x163   :  { %4294 = vmatpush1.bf16.msra.mxu1 %v4293_v56 }
 0x164   :  { %4337 = vmatpush1.bf16.msra.mxu0 %v4287_v35  ;;  %4295 = vmatprep.subr.bf16.mxu1 %v4812_v26  ;;  %v1118_v35 = vshrl.u32 %v1117_v32, 7 }
 0x165   :  { %4338 = vmatprep.subr.bf16.mxu0 %v4812_v26 }
 0x166   :  { %v5268_v38 = vsub.s32 0, %v1118_v35 }
 0x167   :  { %4297 = vmatpush1.bf16.msra.mxu1 %v4296_v59 }
 0x168   :  { %4340 = vmatpush1.bf16.msra.mxu0 %v4290_v44  ;;  %4298 = vmatprep.subr.bf16.mxu1 %v4812_v26 }
 0x169   :  { %4341 = vmatprep.subr.bf16.mxu0 %v4812_v26 }
 0x16b   :  { %4300 = vmatpush1.bf16.msra.mxu1 %v4299_v62 }
 0x16c   :  { %4343 = vmatpush1.bf16.msra.mxu0 %v4293_v56  ;;  %4301 = vmatprep.subr.bf16.mxu1 %v4812_v26 }
 0x16d   :  { %4344 = vmatprep.subr.bf16.mxu0 %v4812_v26 }
 0x16f   :  { %4303 = vmatpush1.bf16.msra.mxu1 %v4302_v1 }
 0x170   :  { %4346 = vmatpush1.bf16.msra.mxu0 %v4296_v59  ;;  %4304 = vmatprep.subr.bf16.mxu1 %v4812_v26 }
 0x171   :  { %4347 = vmatprep.subr.bf16.mxu0 %v4812_v26 }
 0x173   :  { %4306 = vmatpush1.bf16.msra.mxu1 %v4305_v4 }
 0x174   :  { %4349 = vmatpush1.bf16.msra.mxu0 %v4299_v62  ;;  %4308 = vmatprep.subr.bf16.mxu1 %v4307_v7 }
 0x175   :  { %4350 = vmatprep.subr.bf16.mxu0 %v4812_v26 }
 0x178   :  { %4352 = vmatpush1.bf16.msra.mxu0 %v4302_v1 }
 0x179   :  { %4353 = vmatprep.subr.bf16.mxu0 %v4812_v26 }
 0x17c   :  { %4355 = vmatpush1.bf16.msra.mxu0 %v4305_v4 }
 0x216   :  { %v879_v8 = vpop.f32.mrb[0].mxu0 }
 0x217   :  { %v881_v9 = vpop.f32.mrb[1].mxu0 }
 0x218   :  { %v883_v10 = vpop.f32.mrb[2].mxu0  ;;  %v952_v13 = vsel %vm951_vm2, %v881_v9, 0.0 }
 0x219   :  { %v940_v11 = vadd.f32 %v883_v10, %v879_v8  ;;  %v885_v12 = vpop.f32.mrb[3].mxu0 }
 0x21a   :  { %v953_v14 = vsel %vm951_vm2, %v885_v12, 0.0 }
 0x21b   :  { %v954_v15 = vadd.f32 %v953_v14, %v952_v13 }
 0x21e   :  { %v889_v16 = vpop.f32.mrb[4].mxu0 }
 0x21f   :  { %v941_v17 = vadd.f32 %v940_v11, %v889_v16  ;;  %v891_v18 = vpop.f32.mrb[5].mxu0 }
 0x220   :  { %v955_v19 = vsel %vm951_vm2, %v891_v18, 0.0  ;;  %v893_v20 = vpop.f32.mrb[6].mxu0 }
 0x221   :  { %v956_v21 = vadd.f32 %v955_v19, %v954_v15  ;;  %v943_v22 = vsel %vm942_vm3, %v893_v20, 0.0  ;;  %v895_v23 = vpop.f32.mrb[7].mxu0 }
 0x222   :  { %v944_v24 = vadd.f32 %v943_v22, %v941_v17  ;;  %v958_v27 = vsel %vm957_vm4, %v895_v23, 0.0 }
 0x223   :  { %v959_v28 = vadd.f32 %v958_v27, %v956_v21 }
 0x224   :  { %v945_v29 = vrot.slane %v944_v24, 4 }
 0x225   :  { %v960_v31 = vrot.slane %v959_v28, 4 }
 0x226   :  { %v946_v33 = vadd.f32 %v945_v29, %v944_v24 }
 0x227   :  { %v961_v34 = vadd.f32 %v960_v31, %v959_v28 }
 0x228   :  { %v947_v36 = vrot.slane %v946_v33, 2 }
 0x229   :  { %v962_v37 = vrot.slane %v961_v34, 2 }
 0x22a   :  { %v948_v39 = vadd.f32 %v947_v36, %v946_v33 }
 0x22b   :  { %v963_v40 = vadd.f32 %v962_v37, %v961_v34 }
 0x22c   :  { %v949_v42 = vrot.slane %v948_v39, 1 }
 0x22d   :  { %v964_v43 = vrot.slane %v963_v40, 1 }
 0x22e   :  { %v950_v45 = vadd.f32 %v949_v42, %v948_v39 }
 0x22f   :  { %v965_v49 = vadd.f32 %v964_v43, %v963_v40 }
 0x230   :  { %v967_v52 = vmul.f32 0.033333335, %v950_v45 }
 0x231   :  { %v968_v50 = vmul.f32 0.033333335, %v965_v49 }
 0x233   :  { %3814 = vmatprep.mubr.msk.f32.mxu1 %vm951_vm2, %v968_v50 }
 0x234   :  { %1037 = vmatmul.mubr.f32.vlgmr.msra.gmra.mrb[16].mxu1 %v967_v52 }
 0x235   :  { %4310 = vmatpush1.bf16.msra.mxu1 %v4309_v51  ;;  %1110 = vmatprep.mubr.f32.mxu1 %v4813_v54 }
 0x236   :  { %4357 = vmatprep.subr.bf16.mxu1 %v4307_v7 }
 0x307   :  { %v1038_v55 = vpop.f32.mrb[16].mxu1 }
 0x308   :  { %v1040_v30 = vpop.f32.mrb[17].mxu1  ;;  %3815 = vmatmul.mubr.msk.f32.vlgmr.msra.gmra.mrb[18].mxu1 %vm1042_vm5, %v1038_v55 }
 0x309   :  { %4359 = vmatpush1.bf16.msra.mxu1 %v4309_v51  ;;  %1306 = vmatprep.mubr.f32.mxu1 %v4813_v54 }
 0x3db   :  { %v1112_v41 = vpop.f32.mrb[18].mxu1 }
 0x3dc   :  { %v1120_v44 = vrot.slane %v1112_v41, %v5268_v38  ;;  %v1114_v47 = vpop.f32.mrb[19].mxu1 }
 0x3dd   :  { %v1124_v53 = vrot.slane %v1114_v47, %v5268_v38 }
 0x3de   :  { %v1125_v56 = vsub.f32 %v879_v8, %v1120_v44  ;;  %v1127_v57 = vsub.f32 %v883_v10, %v1120_v44  ;;  %v1129_v58 = vsub.f32 %v889_v16, %v1120_v44  ;;  %v1131_v59 = vsub.f32 %v893_v20, %v1120_v44 }
 0x3df   :  { %v1126_v60 = vsub.f32 %v881_v9, %v1124_v53  ;;  %v1128_v61 = vsub.f32 %v885_v12, %v1124_v53  ;;  %v1130_v62 = vsub.f32 %v891_v18, %v1124_v53  ;;  %v1132_v63 = vsub.f32 %v895_v23, %v1124_v53 }
 0x3e0   :  { %v1133_v0 = vmul.f32 %v1125_v56, %v1125_v56  ;;  %v1135_v1 = vmul.f32 %v1127_v57, %v1127_v57  ;;  %v1139_v2 = vmul.f32 %v1131_v59, %v1131_v59  ;;  %v1137_v6 = vmul.f32 %v1129_v58, %v1129_v58 }
 0x3e1   :  { %v1134_v3 = vmul.f32 %v1126_v60, %v1126_v60  ;;  %v1136_v4 = vmul.f32 %v1128_v61, %v1128_v61  ;;  %v1138_v5 = vmul.f32 %v1130_v62, %v1130_v62  ;;  %v1140_v11 = vmul.f32 %v1132_v63, %v1132_v63 }
 0x3e2   :  { %v1141_v7 = vadd.f32 %v1135_v1, %v1133_v0  ;;  %v1143_v9 = vsel %vm942_vm3, %v1139_v2, 0.0 }
 0x3e3   :  { %v1151_v13 = vsel %vm951_vm2, %v1134_v3, 0.0  ;;  %v1152_v8 = vsel %vm951_vm2, %v1136_v4, 0.0  ;;  %v1154_v12 = vsel %vm951_vm2, %v1138_v5, 0.0  ;;  %v1156_v17 = vsel %vm957_vm4, %v1140_v11, 0.0 }
 0x3e4   :  { %v1142_v10 = vadd.f32 %v1141_v7, %v1137_v6  ;;  %v1153_v14 = vadd.f32 %v1152_v8, %v1151_v13  ;;  %vm2632_vm4 = vcmask 261120  }
 0x3e6   :  { %v1144_v15 = vadd.f32 %v1143_v9, %v1142_v10  ;;  %v1155_v16 = vadd.f32 %v1154_v12, %v1153_v14  ;;  %v4571_v14 = vld [vmem:[%s6175_s5] sm:$0x3f]   ;;  %v4572_v9 = vld [vmem:[%s6175_s5 + $0x10] sm:$0x3f]  }
 0x3e7   :  { %v4576_v12 = vld [vmem:[%s6176_s6 + $0xf4] ss:$8 sps:$4 sm:$0xff]  }
 0x3e8   :  { %v1145_v18 = vrot.slane %v1144_v15, 4  ;;  %v1157_v19 = vadd.f32 %v1156_v17, %v1155_v16  ;;  %v4589_v16 = vld [vmem:[%s6175_s5 + $0x18] sm:$0x3f]  }
 0x3e9   :  { %v4574_v17 = vld [vmem:[%s6176_s6 + $0xf0] ss:$8 sps:$4 sm:$0xff]  }
 0x3ea   :  { %v1146_v20 = vadd.f32 %v1145_v18, %v1144_v15  ;;  %v1158_v21 = vrot.slane %v1157_v19, 4  ;;  %v4573_v15 = vld [vmem:[%s6175_s5 + $0x8] sm:$0x3f]  }
 0x3eb   :  { %v4579_v18 = vld [vmem:[%s6176_s6 + $0x104] ss:$8 sps:$4 sm:$0xff]  }
 0x3ec   :  { %v1159_v22 = vadd.f32 %v1158_v21, %v1157_v19  ;;  %v1147_v23 = vrot.slane %v1146_v20, 2  ;;  %v4577_v19 = vld [vmem:[%s6176_s6 + $0x100] ss:$8 sps:$4 sm:$0xff]   ;;  %v4580_v21 = vld [vmem:[%s6176_s6 + $0x110] ss:$8 sps:$4 sm:$0xff]  }
 0x3ee   :  { %v1160_v24 = vrot.slane %v1159_v22, 2  ;;  %v1148_v27 = vadd.f32 %v1147_v23, %v1146_v20  ;;  %v4582_v20 = vld [vmem:[%s6176_s6 + $0x114] ss:$8 sps:$4 sm:$0xff]   ;;  %v4583_v23 = vld [vmem:[%s6176_s6 + $0x120] ss:$8 sps:$4 sm:$0xff]  }
 0x3f0   :  { %v1161_v28 = vadd.f32 %v1160_v24, %v1159_v22  ;;  %v1149_v29 = vrot.slane %v1148_v27, 1  ;;  %v4585_v22 = vld [vmem:[%s6176_s6 + $0x124] ss:$8 sps:$4 sm:$0xff]   ;;  %v4588_v24 = vld [vmem:[%s6176_s6 + $0x134] ss:$8 sps:$4 sm:$0xff]  }
 0x3f2   :  { %v1162_v31 = vrot.slane %v1161_v28, 1  ;;  %v1150_v33 = vadd.f32 %v1149_v29, %v1148_v27  ;;  %v4586_v27 = vld [vmem:[%s6176_s6 + $0x130] ss:$8 sps:$4 sm:$0xff]   ;;  %v4590_v29 = vld [vmem:[%s6176_s6 + $0x140] ss:$8 sps:$4 sm:$0xff]  }
 0x3f4   :  { %v1163_v34 = vadd.f32 %v1162_v31, %v1161_v28  ;;  %v1164_v37 = vmul.f32 0.033333335, %v1150_v33  ;;  %v4592_v28 = vld [vmem:[%s6176_s6 + $0x144] ss:$8 sps:$4 sm:$0xff]   ;;  %v4595_v31 = vld [vmem:[%s6176_s6 + $0x154] ss:$8 sps:$4 sm:$0xff]  }
 0x3f5   :  { %v4593_v33 = vld [vmem:[%s6176_s6 + $0x150] ss:$8 sps:$4 sm:$0xff]  }
 0x3f6   :  { %v1165_v36 = vmul.f32 0.033333335, %v1163_v34  ;;  %v4598_v34 = vld [vmem:[%s6176_s6 + $0x164] ss:$8 sps:$4 sm:$0xff]  }
 0x3f8   :  { %3816 = vmatprep.mubr.msk.f32.mxu0 %vm951_vm2, %v1165_v36  ;;  %v4596_v36 = vld [vmem:[%s6176_s6 + $0x160] ss:$8 sps:$4 sm:$0xff]  }
 0x3f9   :  { %1234 = vmatmul.mubr.f32.vlgmr.msra.gmra.mrb[8].mxu0 %v1164_v37  ;;  %v4601_v37 = vld [vmem:[%s6176_s6 + $0x174] ss:$8 sps:$4 sm:$0xff]  }
 0x3fa   :  { %1974 = vmatprep.mubr.bf16.mxu0 %v4811_v25 }
 0x4cc   :  { %v1235_v39 = vpop.f32.mrb[8].mxu0 }
 0x4cd   :  { %v1237_v40 = vpop.f32.mrb[9].mxu0  ;;  %3817 = vmatmul.mubr.msk.f32.vlgmr.msra.gmra.mrb[20].mxu1 %vm1042_vm5, %v1235_v39  ;;  %v4599_v39 = vld [vmem:[%s6176_s6 + $0x170] ss:$8 sps:$4 sm:$0xff]  }
 0x4ce   :  { %1409 = vmatprep.mubr.bf16.mxu1 %v4811_v25  ;;  %v4604_v40 = vld [vmem:[%s6176_s6 + $0x184] ss:$8 sps:$4 sm:$0xff]  }
 0x5a0   :  { %v1308_v42 = vpop.f32.mrb[20].mxu1 }
 0x5a1   :  { %v1309_v43 = vadd.f32 1e-05, %v1308_v42  ;;  %v1310_v45 = vpop.f32.mrb[21].mxu1  ;;  %v4602_v42 = vld [vmem:[%s6176_s6 + $0x180] ss:$8 sps:$4 sm:$0xff]  }
 0x5a2   :  { %v1311_v46 = vadd.f32 1e-05, %v1310_v45  ;;  %v4605_v45 = vld [vmem:[%s6176_s6 + $0x190] ss:$8 sps:$4 sm:$0xff]  }
 0x5a3   :  { %4803 = vrsqrt.f32 %v1309_v43  ;;  %v4607_v43 = vld [vmem:[%s6176_s6 + $0x194] ss:$8 sps:$4 sm:$0xff]  }
 0x5a4   :  { %4805 = vrsqrt.f32 %v1311_v46  ;;  %v4610_v46 = vld [vmem:[%s6176_s6 + $0x1a4] ss:$8 sps:$4 sm:$0xff]  }
 0x5ad   :  { %v4804_v48 = vpop.eup %4803 }
 0x5ae   :  { %v4806_v49 = vpop.eup %4805  ;;  %v1318_v50 = vrot.slane %v4804_v48, %v5268_v38  ;;  %v4608_v48 = vld [vmem:[%s6176_s6 + $0x1a0] ss:$8 sps:$4 sm:$0xff]  }
 0x5af   :  { %v1322_v51 = vrot.slane %v4806_v49, %v5268_v38  ;;  %v4611_v49 = vld [vmem:[%s6176_s6 + $0x1b0] ss:$8 sps:$4 sm:$0xff]  }
 0x5b0   :  { %v1323_v52 = vmul.f32 %v1318_v50, %v1125_v56  ;;  %v1325_v55 = vmul.f32 %v1318_v50, %v1127_v57  ;;  %v1327_v30 = vmul.f32 %v1318_v50, %v1129_v58  ;;  %v1329_v32 = vmul.f32 %v1318_v50, %v1131_v59  ;;  %v4613_v50 = vld [vmem:[%s6176_s6 + $0x1b4] ss:$8 sps:$4 sm:$0xff]  }
 0x5b1   :  { %v1324_v35 = vmul.f32 %v1322_v51, %v1126_v60  ;;  %v1326_v41 = vmul.f32 %v1322_v51, %v1128_v61  ;;  %v1328_v44 = vmul.f32 %v1322_v51, %v1130_v62  ;;  %v1330_v47 = vmul.f32 %v1322_v51, %v1132_v63  ;;  %v4616_v51 = vld [vmem:[%s6176_s6 + $0x1c4] ss:$8 sps:$4 sm:$0xff]  }
 0x5b2   :  { %vm1331_vm6 = vcmp.ge.f32.partialorder %v1323_v52, 0.0  ;;  %vm1333_vm7 = vcmp.ge.f32.partialorder %v1325_v55, 0.0  ;;  %v1339_v53 = vmul.f32 0.2, %v1323_v52  ;;  %v1341_v0 = vmul.f32 0.2, %v1325_v55 }
 0x5b3   :  { %vm1332_vm8 = vcmp.ge.f32.partialorder %v1324_v35, 0.0  ;;  %vm1334_vm9 = vcmp.ge.f32.partialorder %v1326_v41, 0.0  ;;  %v1340_v1 = vmul.f32 0.2, %v1324_v35  ;;  %v1342_v2 = vmul.f32 0.2, %v1326_v41 }
 0x5b4   :  { %v1347_v3 = vsel %vm1331_vm6, %v1323_v52, %v1339_v53  ;;  %v1349_v4 = vsel %vm1333_vm7, %v1325_v55, %v1341_v0  ;;  %vm1336_vm10 = vcmp.ge.f32.partialorder %v1328_v44, 0.0  ;;  %vm1338_vm11 = vcmp.ge.f32.partialorder %v1330_v47, 0.0  ;;  %v4614_v52 = vld [vmem:[%s6176_s6 + $0x1c0] ss:$8 sps:$4 sm:$0xff]   ;;  %v4617_v55 = vld [vmem:[%s6176_s6 + $0x1d0] ss:$8 sps:$4 sm:$0xff]  }
 0x5b5   :  { %v1348_v5 = vsel %vm1332_vm8, %v1324_v35, %v1340_v1  ;;  %v1350_v56 = vsel %vm1334_vm9, %v1326_v41, %v1342_v2  ;;  %v1344_v57 = vmul.f32 0.2, %v1328_v44  ;;  %v1346_v59 = vmul.f32 0.2, %v1330_v47 }
 0x5b6   :  { %v1356_v58 = vpack.c.bf16 %v1350_v56, %v1348_v5  ;;  %vm1335_vm12 = vcmp.ge.f32.partialorder %v1327_v30, 0.0  ;;  %vm1337_vm13 = vcmp.ge.f32.partialorder %v1329_v32, 0.0  ;;  %v1355_v60 = vpack.c.bf16 %v1349_v4, %v1347_v3 }
 0x5b7   :  { %v1352_v61 = vsel %vm1336_vm10, %v1328_v44, %v1344_v57  ;;  %v1343_v62 = vmul.f32 0.2, %v1327_v30  ;;  %v1345_v63 = vmul.f32 0.2, %v1329_v32  ;;  %v1354_v6 = vsel %vm1338_vm11, %v1330_v47, %v1346_v59 }
 0x5b8   :  { %1377 = vmatprep.subr.bf16.mxu1 %v1356_v58  ;;  %1942 = vmatprep.subr.bf16.mxu0 %v1356_v58  ;;  %v1358_v7 = vpack.c.bf16 %v1354_v6, %v1352_v61  ;;  %v4625_v6 = vld [vmem:[%s6176_s6 + $0x14] ss:$8 sps:$4 sm:$0xff]   ;;  %vm2918_vm9 = vcmask 97280  }
 0x5b9   :  { %1378 = vmatpush1.bf16.msra.mxu1 %v1355_v60  ;;  %1943 = vmatpush1.bf16.msra.mxu0 %v1355_v60  ;;  %v1351_v11 = vsel %vm1335_vm12, %v1327_v30, %v1343_v62  ;;  %v1353_v13 = vsel %vm1337_vm13, %v1329_v32, %v1345_v63  ;;  %v4619_v30 = vld [vmem:[%s6176_s6 + $0x1d4] ss:$8 sps:$4 sm:$0xff]   ;;  %v4622_v32 = vld [vmem:[%s6176_s6 + $0x4] ss:$8 sps:$4 sm:$0xff]   ;;  %v4620_v63 = vld [vmem:[%s6176_s6] ss:$8 sps:$4 sm:$0xff]  }
 0x5ba   :  { %v1357_v8 = vpack.c.bf16 %v1353_v13, %v1351_v11  ;;  %3819 = vmatprep.subr.msk.bf16.mxu1 %vm1370_vm14, %v1358_v7  ;;  %3921 = vmatprep.subr.msk.bf16.mxu0 %vm1370_vm14, %v1358_v7  ;;  %v4628_v11 = vld [vmem:[%s6176_s6 + $0x24] ss:$8 sps:$4 sm:$0xff]   ;;  %v4626_v13 = vld [vmem:[%s6176_s6 + $0x20] ss:$8 sps:$4 sm:$0xff]  }
 0x5bc   :  { %v1372_v10 = vsel %vm1370_vm14, %v1357_v8, 0  ;;  %v4631_v8 = vld [vmem:[%s6176_s6 + $0x34] ss:$8 sps:$4 sm:$0xff]  }
 0x5bd   :  { %1380 = vmatpush1.bf16.msra.mxu1 %v1372_v10  ;;  %1945 = vmatpush1.bf16.msra.mxu0 %v1372_v10 }
 0x5be   :  { %1463 = vmatprep.subr.bf16.mxu1 %v1356_v58  ;;  %2229 = vmatprep.subr.bf16.mxu0 %v1356_v58 }
 0x5c0   :  { %3820 = vmatmul.mubr.msk.bf16.vlgmr.msra.gmra.mrb[24].mxu1 %vm1366_vm15, %v4571_v14  ;;  %3922 = vmatmul.mubr.msk.bf16.vlgmr.msra.gmra.mrb[12].mxu0 %vm1366_vm15, %v4572_v9  ;;  %v4634_v14 = vld [vmem:[%s6176_s6 + $0x44] ss:$8 sps:$4 sm:$0xff]   ;;  %v4632_v9 = vld [vmem:[%s6176_s6 + $0x40] ss:$8 sps:$4 sm:$0xff]  }
 0x5c1   :  { %1464 = vmatpush1.bf16.msra.mxu1 %v1355_v60  ;;  %2230 = vmatpush1.bf16.msra.mxu0 %v1355_v60 }
 0x5c2   :  { %3824 = vmatprep.subr.msk.bf16.mxu1 %vm1370_vm14, %v1358_v7  ;;  %3987 = vmatprep.subr.msk.bf16.mxu0 %vm1370_vm14, %v1358_v7  ;;  %v4623_v7 = vld [vmem:[%s6176_s6 + $0x10] ss:$8 sps:$4 sm:$0xff]  }
 0x5c3   :  { %1495 = vmatprep.mubr.bf16.mxu1 %v4811_v25  ;;  %2261 = vmatprep.mubr.bf16.mxu0 %v4811_v25 }
 0x5c5   :  { %1466 = vmatpush1.bf16.msra.mxu1 %v1372_v10  ;;  %2232 = vmatpush1.bf16.msra.mxu0 %v1372_v10  ;;  %v4629_v10 = vld [vmem:[%s6176_s6 + $0x30] ss:$8 sps:$4 sm:$0xff]  }
 0x5c6   :  { %1692 = vmatprep.subr.bf16.mxu1 %v4576_v12  ;;  %4360 = vmatprep.subr.bf16.mxu0 %v4812_v26  ;;  %v4637_v12 = vld [vmem:[%s6176_s6 + $0x54] ss:$8 sps:$4 sm:$0xff]  }
 0x5c8   :  { %3825 = vmatmul.mubr.msk.bf16.vlgmr.msra.gmra.mrb[28].mxu1 %vm1366_vm15, %v4573_v15  ;;  %3988 = vmatmul.mubr.msk.bf16.vlgmr.msra.gmra.mrb[16].mxu0 %vm1366_vm15, %v4589_v16  ;;  %v4635_v15 = vld [vmem:[%s6176_s6 + $0x50] ss:$8 sps:$4 sm:$0xff]   ;;  %v4640_v16 = vld [vmem:[%s6176_s6 + $0x64] ss:$8 sps:$4 sm:$0xff]  }
 0x5c9   :  { %1693 = vmatpush1.bf16.msra.mxu1 %v4574_v17  ;;  %v4638_v17 = vld [vmem:[%s6176_s6 + $0x60] ss:$8 sps:$4 sm:$0xff]  }
 0x5ca   :  { %1694 = vmatprep.subr.bf16.mxu1 %v4579_v18  ;;  %v4643_v18 = vld [vmem:[%s6176_s6 + $0x74] ss:$8 sps:$4 sm:$0xff]  }
 0x5cd   :  { %1695 = vmatpush1.bf16.msra.mxu1 %v4577_v19  ;;  %v4641_v19 = vld [vmem:[%s6176_s6 + $0x70] ss:$8 sps:$4 sm:$0xff]  }
 0x5ce   :  { %1696 = vmatprep.subr.bf16.mxu1 %v4582_v20  ;;  %v4646_v20 = vld [vmem:[%s6176_s6 + $0x84] ss:$8 sps:$4 sm:$0xff]  }
 0x5d1   :  { %1697 = vmatpush1.bf16.msra.mxu1 %v4580_v21  ;;  %v4644_v21 = vld [vmem:[%s6176_s6 + $0x80] ss:$8 sps:$4 sm:$0xff]  }
 0x5d2   :  { %1698 = vmatprep.subr.bf16.mxu1 %v4585_v22  ;;  %v4649_v22 = vld [vmem:[%s6176_s6 + $0x94] ss:$8 sps:$4 sm:$0xff]  }
 0x5d5   :  { %1699 = vmatpush1.bf16.msra.mxu1 %v4583_v23  ;;  %v4647_v23 = vld [vmem:[%s6176_s6 + $0x90] ss:$8 sps:$4 sm:$0xff]  }
 0x5d6   :  { %1700 = vmatprep.subr.bf16.mxu1 %v4588_v24  ;;  %v4652_v24 = vld [vmem:[%s6176_s6 + $0xa4] ss:$8 sps:$4 sm:$0xff]  }
 0x5d9   :  { %1701 = vmatpush1.bf16.msra.mxu1 %v4586_v27  ;;  %v4650_v27 = vld [vmem:[%s6176_s6 + $0xa0] ss:$8 sps:$4 sm:$0xff]  }
 0x5da   :  { %1702 = vmatprep.subr.bf16.mxu1 %v4592_v28  ;;  %v4655_v28 = vld [vmem:[%s6176_s6 + $0xb4] ss:$8 sps:$4 sm:$0xff]  }
 0x5dd   :  { %1703 = vmatpush1.bf16.msra.mxu1 %v4590_v29  ;;  %v4653_v29 = vld [vmem:[%s6176_s6 + $0xb0] ss:$8 sps:$4 sm:$0xff]  }
 0x5de   :  { %1704 = vmatprep.subr.bf16.mxu1 %v4595_v31 }
 0x5e1   :  { %1705 = vmatpush1.bf16.msra.mxu1 %v4593_v33  ;;  %v4658_v33 = vld [vmem:[%s6176_s6 + $0xc4] ss:$8 sps:$4 sm:$0xff]  }
 0x5e2   :  { %1706 = vmatprep.subr.bf16.mxu1 %v4598_v34 }
 0x5e5   :  { %1707 = vmatpush1.bf16.msra.mxu1 %v4596_v36 }
 0x5e6   :  { %1708 = vmatprep.subr.bf16.mxu1 %v4601_v37 }
 0x5e9   :  { %1709 = vmatpush1.bf16.msra.mxu1 %v4599_v39 }
 0x5ea   :  { %1710 = vmatprep.subr.bf16.mxu1 %v4604_v40  ;;  %v4656_v40 = vld [vmem:[%s6176_s6 + $0xc0] ss:$8 sps:$4 sm:$0xff]  }
 0x5ed   :  { %1711 = vmatpush1.bf16.msra.mxu1 %v4602_v42 }
 0x5ee   :  { %1712 = vmatprep.subr.bf16.mxu1 %v4607_v43  ;;  %v4661_v43 = vld [vmem:[%s6176_s6 + $0xd4] ss:$8 sps:$4 sm:$0xff]  }
 0x5f1   :  { %1713 = vmatpush1.bf16.msra.mxu1 %v4605_v45  ;;  %v4659_v45 = vld [vmem:[%s6176_s6 + $0xd0] ss:$8 sps:$4 sm:$0xff]  }
 0x5f2   :  { %1714 = vmatprep.subr.bf16.mxu1 %v4610_v46  ;;  %v4664_v46 = vld [vmem:[%s6176_s6 + $0xe4] ss:$8 sps:$4 sm:$0xff]  }
 0x5f5   :  { %1715 = vmatpush1.bf16.msra.mxu1 %v4608_v48  ;;  %v4662_v48 = vld [vmem:[%s6176_s6 + $0xe0] ss:$8 sps:$4 sm:$0xff]  }
 0x5f6   :  { %1716 = vmatprep.subr.bf16.mxu1 %v4613_v50  ;;  %v2506_v50 = vld [vmem:[%s6177_s7 + $0x8] sm:$0xff] }
 0x5f9   :  { %1717 = vmatpush1.bf16.msra.mxu1 %v4611_v49  ;;  %v2505_v49 = vld [vmem:[%s6177_s7] sm:$0xff] }
 0x5fa   :  { %1718 = vmatprep.subr.bf16.mxu1 %v4616_v51  ;;  %v2507_v51 = vld [vmem:[%s6177_s7 + $0x10] sm:$0xff] }
 0x5fd   :  { %1719 = vmatpush1.bf16.msra.mxu1 %v4614_v52  ;;  %v4667_v52 = vld [vmem:[%s6176_s6 + $0x1e4] ss:$8 sps:$4 sm:$0xff]  }
 0x5fe   :  { %1720 = vmatprep.subr.bf16.mxu1 %v4619_v30  ;;  %v2508_v30 = vld [vmem:[%s6177_s7 + $0x18] sm:$0xff] }
 0x601   :  { %1721 = vmatpush1.bf16.msra.mxu1 %v4617_v55  ;;  %v5531_v55 = vpack.c.bf16 %v2506_v50, %v2505_v49  ;;  %v4712_v49 = vld [vmem:[%s6176_s6 + $0x2d4] ss:$8 sps:$4 sm:$0xff]   ;;  %v4710_v50 = vld [vmem:[%s6176_s6 + $0x2d0] ss:$8 sps:$4 sm:$0xff]  }
 0x602   :  { %1888 = vmatprep.subr.bf16.mxu1 %v4622_v32  ;;  %v5537_v32 = vpack.c.bf16 %v2508_v30, %v2507_v51  ;;  %v4715_v51 = vld [vmem:[%s6176_s6 + $0x2e4] ss:$8 sps:$4 sm:$0xff]   ;;  %v4718_v30 = vld [vmem:[%s6176_s6 + $0x2f4] ss:$8 sps:$4 sm:$0xff]  }
 0x603   :  { %4362 = vmatpush1.bf16.msra.mxu0 %v5531_v55 }
 0x604   :  { %4363 = vmatprep.subr.bf16.mxu0 %v4812_v26 }
 0x607   :  { %4365 = vmatpush1.bf16.msra.mxu0 %v5537_v32 }
 0x608   :  { %4366 = vmatprep.subr.bf16.mxu0 %v4812_v26 }
 0x693   :  { %v5400_v35 = vpop.f32.mrb[24].mxu1  ;;  %v5402_v41 = vpop.f32.mrb[12].mxu0 }
 0x694   :  { %v1413_v44 = vpop.f32.mrb[25].mxu1  ;;  %v5404_v47 = vpop.f32.mrb[13].mxu0 }
 0x695   :  { %v5406_v53 = vpop.f32.mrb[26].mxu1  ;;  %v5408_v0 = vpop.f32.mrb[14].mxu0 }
 0x696   :  { %v1420_v1 = vpack.c.bf16 %v5406_v53, %v5400_v35  ;;  %v1417_v2 = vpop.f32.mrb[27].mxu1  ;;  %v1985_v3 = vpack.c.bf16 %v5408_v0, %v5402_v41  ;;  %v5414_v4 = vpop.f32.mrb[15].mxu0  ;;  %v2512_v35 = vld [vmem:[%s6177_s7 + $0x38] sm:$0xff]  ;;  %v4673_v53 = vld [vmem:[%s6176_s6 + $0x204] ss:$8 sps:$4 sm:$0xff]  }
 0x697   :  { %v1421_v5 = vpack.c.bf16 %v1417_v2, %v1413_v44  ;;  %v1986_v56 = vpack.c.bf16 %v5414_v4, %v5404_v47  ;;  %v4665_v44 = vld [vmem:[%s6176_s6 + $0x1e0] ss:$8 sps:$4 sm:$0xff]   ;;  %v4716_v41 = vld [vmem:[%s6176_s6 + $0x2f0] ss:$8 sps:$4 sm:$0xff]   ;;  %v4721_v0 = vld [vmem:[%s6176_s6 + $0x304] ss:$8 sps:$4 sm:$0xff]  }
 0x698   :  { %v2509_v2 = vld [vmem:[%s6177_s7 + $0x20] sm:$0xff] }
 0x699   :  { %v2513_v4 = vld [vmem:[%s6177_s7 + $0x40] sm:$0xff] }
 0x69b   :  { %v1497_v57 = vpop.f32.mrb[28].mxu1  ;;  %v5489_v31 = vpop.f32.mrb[16].mxu0 }
 0x69c   :  { %v1499_v58 = vpop.f32.mrb[29].mxu1  ;;  %v5494_v34 = vpop.f32.mrb[17].mxu0 }
 0x69d   :  { %v1501_v59 = vpop.f32.mrb[30].mxu1  ;;  %v5496_v36 = vpop.f32.mrb[18].mxu0 }
 0x69e   :  { %v1506_v60 = vpack.c.bf16 %v1501_v59, %v1497_v57  ;;  %v1503_v61 = vpop.f32.mrb[31].mxu1  ;;  %v2272_v37 = vpack.c.bf16 %v5496_v36, %v5489_v31  ;;  %v5500_v39 = vpop.f32.mrb[19].mxu0  ;;  %v4670_v57 = vld [vmem:[%s6176_s6 + $0x1f4] ss:$8 sps:$4 sm:$0xff]   ;;  %v4668_v59 = vld [vmem:[%s6176_s6 + $0x1f0] ss:$8 sps:$4 sm:$0xff]  }
 0x69f   :  { %v1507_v62 = vpack.c.bf16 %v1503_v61, %v1499_v58  ;;  %v2273_v42 = vpack.c.bf16 %v5500_v39, %v5494_v34  ;;  %v4676_v61 = vld [vmem:[%s6176_s6 + $0x214] ss:$8 sps:$4 sm:$0xff]   ;;  %v4722_v39 = vld [vmem:[%s6176_s6 + $0x310] ss:$8 sps:$4 sm:$0xff]   ;;  %v2521_v31 = vld [vmem:[%s6177_s7 + $0x80] sm:$0xff] }
 0x6a0   :  { %v4724_v34 = vld [vmem:[%s6176_s6 + $0x314] ss:$8 sps:$4 sm:$0xff]   ;;  %v2522_v36 = vld [vmem:[%s6177_s7 + $0x88] sm:$0xff] }
 0x6a1   :  { %3886 = vmatprep.mubr.msk.bf16.mxu1 %vm951_vm2, %v1507_v62 }
 0x6a2   :  { %1725 = vmatmul.mubr.bf16.vlgmr.msra.gmra.mrb[32].mxu1 %v1506_v60  ;;  %v2511_v60 = vld [vmem:[%s6177_s7 + $0x30] sm:$0xff] }
 0x6a3   :  { %1889 = vmatpush1.bf16.msra.mxu1 %v4620_v63  ;;  %3917 = vmatprep.mubr.msk.bf16.mxu1 %vm951_vm2, %v1421_v5  ;;  %v2510_v5 = vld [vmem:[%s6177_s7 + $0x28] sm:$0xff]  ;;  %v5576_v47 = vpack.c.bf16 %v2512_v35, %v2511_v60  ;;  %v4674_v63 = vld [vmem:[%s6176_s6 + $0x210] ss:$8 sps:$4 sm:$0xff]   ;;  %v4736_v60 = vld [vmem:[%s6176_s6 + $0x354] ss:$8 sps:$4 sm:$0xff]  }
 0x6a4   :  { %1890 = vmatprep.subr.bf16.mxu1 %v4625_v6  ;;  %v5556_v58 = vpack.c.bf16 %v2510_v5, %v2509_v2  ;;  %v2515_v6 = vld [vmem:[%s6177_s7 + $0x50] sm:$0xff] }
 0x6a5   :  { %v4730_v2 = vld [vmem:[%s6176_s6 + $0x334] ss:$8 sps:$4 sm:$0xff]   ;;  %v4728_v5 = vld [vmem:[%s6176_s6 + $0x330] ss:$8 sps:$4 sm:$0xff]  }
 0x6a6   :  { %4368 = vmatpush1.bf16.msra.mxu0 %v5556_v58  ;;  %v4734_v35 = vld [vmem:[%s6176_s6 + $0x350] ss:$8 sps:$4 sm:$0xff]  }
 0x6a7   :  { %1891 = vmatpush1.bf16.msra.mxu1 %v4623_v7  ;;  %4369 = vmatprep.subr.bf16.mxu0 %v4812_v26  ;;  %v2516_v7 = vld [vmem:[%s6177_s7 + $0x58] sm:$0xff] }
 0x6a8   :  { %1892 = vmatprep.subr.bf16.mxu1 %v4628_v11  ;;  %v4679_v11 = vld [vmem:[%s6176_s6 + $0x224] ss:$8 sps:$4 sm:$0xff]  }
 0x6aa   :  { %4371 = vmatpush1.bf16.msra.mxu0 %v5576_v47 }
 0x6ab   :  { %1893 = vmatpush1.bf16.msra.mxu1 %v4626_v13  ;;  %4372 = vmatprep.subr.bf16.mxu0 %v4812_v26  ;;  %v5608_v13 = vpack.c.bf16 %v2516_v7, %v2515_v6  ;;  %v4748_v6 = vld [vmem:[%s6176_s6 + $0x394] ss:$8 sps:$4 sm:$0xff]   ;;  %v4746_v7 = vld [vmem:[%s6176_s6 + $0x390] ss:$8 sps:$4 sm:$0xff]  }
 0x6ac   :  { %1894 = vmatprep.subr.bf16.mxu1 %v4631_v8  ;;  %v4677_v8 = vld [vmem:[%s6176_s6 + $0x220] ss:$8 sps:$4 sm:$0xff]  }
 0x6af   :  { %1895 = vmatpush1.bf16.msra.mxu1 %v4629_v10  ;;  %v2517_v10 = vld [vmem:[%s6177_s7 + $0x60] sm:$0xff] }
 0x6b0   :  { %1896 = vmatprep.subr.bf16.mxu1 %v4634_v14  ;;  %v2518_v14 = vld [vmem:[%s6177_s7 + $0x68] sm:$0xff] }
 0x6b3   :  { %1897 = vmatpush1.bf16.msra.mxu1 %v4632_v9  ;;  %v4682_v9 = vld [vmem:[%s6176_s6 + $0x234] ss:$8 sps:$4 sm:$0xff]  }
 0x6b4   :  { %1898 = vmatprep.subr.bf16.mxu1 %v4637_v12  ;;  %v5624_v12 = vpack.c.bf16 %v2518_v14, %v2517_v10  ;;  %v4754_v10 = vld [vmem:[%s6176_s6 + $0x3b4] ss:$8 sps:$4 sm:$0xff]   ;;  %v4752_v14 = vld [vmem:[%s6176_s6 + $0x3b0] ss:$8 sps:$4 sm:$0xff]  }
 0x6b7   :  { %1899 = vmatpush1.bf16.msra.mxu1 %v4635_v15  ;;  %v4680_v15 = vld [vmem:[%s6176_s6 + $0x230] ss:$8 sps:$4 sm:$0xff]  }
 0x6b8   :  { %1900 = vmatprep.subr.bf16.mxu1 %v4640_v16  ;;  %v4685_v16 = vld [vmem:[%s6176_s6 + $0x244] ss:$8 sps:$4 sm:$0xff]  }
 0x6bb   :  { %1901 = vmatpush1.bf16.msra.mxu1 %v4638_v17  ;;  %v4683_v17 = vld [vmem:[%s6176_s6 + $0x240] ss:$8 sps:$4 sm:$0xff]  }
 0x6bc   :  { %1902 = vmatprep.subr.bf16.mxu1 %v4643_v18  ;;  %v4688_v18 = vld [vmem:[%s6176_s6 + $0x254] ss:$8 sps:$4 sm:$0xff]  }
 0x6bf   :  { %1903 = vmatpush1.bf16.msra.mxu1 %v4641_v19  ;;  %v4686_v19 = vld [vmem:[%s6176_s6 + $0x250] ss:$8 sps:$4 sm:$0xff]  }
 0x6c0   :  { %1904 = vmatprep.subr.bf16.mxu1 %v4646_v20  ;;  %v4691_v20 = vld [vmem:[%s6176_s6 + $0x264] ss:$8 sps:$4 sm:$0xff]  }
 0x6c3   :  { %1905 = vmatpush1.bf16.msra.mxu1 %v4644_v21  ;;  %v4689_v21 = vld [vmem:[%s6176_s6 + $0x260] ss:$8 sps:$4 sm:$0xff]  }
 0x6c4   :  { %1906 = vmatprep.subr.bf16.mxu1 %v4649_v22  ;;  %v4694_v22 = vld [vmem:[%s6176_s6 + $0x274] ss:$8 sps:$4 sm:$0xff]  }
 0x6c7   :  { %1907 = vmatpush1.bf16.msra.mxu1 %v4647_v23  ;;  %v4692_v23 = vld [vmem:[%s6176_s6 + $0x270] ss:$8 sps:$4 sm:$0xff]  }
 0x6c8   :  { %1908 = vmatprep.subr.bf16.mxu1 %v4652_v24  ;;  %v4697_v24 = vld [vmem:[%s6176_s6 + $0x284] ss:$8 sps:$4 sm:$0xff]  }
 0x6cb   :  { %1909 = vmatpush1.bf16.msra.mxu1 %v4650_v27  ;;  %v4695_v27 = vld [vmem:[%s6176_s6 + $0x280] ss:$8 sps:$4 sm:$0xff]  }
 0x6cc   :  { %1910 = vmatprep.subr.bf16.mxu1 %v4655_v28  ;;  %v4700_v28 = vld [vmem:[%s6176_s6 + $0x294] ss:$8 sps:$4 sm:$0xff]  }
 0x6cf   :  { %1911 = vmatpush1.bf16.msra.mxu1 %v4653_v29  ;;  %v4698_v29 = vld [vmem:[%s6176_s6 + $0x290] ss:$8 sps:$4 sm:$0xff]  }
 0x6d0   :  { %1912 = vmatprep.subr.bf16.mxu1 %v4658_v33  ;;  %v4703_v33 = vld [vmem:[%s6176_s6 + $0x2a4] ss:$8 sps:$4 sm:$0xff]  }
 0x6d3   :  { %1913 = vmatpush1.bf16.msra.mxu1 %v4656_v40  ;;  %v4701_v40 = vld [vmem:[%s6176_s6 + $0x2a0] ss:$8 sps:$4 sm:$0xff]  }
 0x6d4   :  { %1914 = vmatprep.subr.bf16.mxu1 %v4661_v43  ;;  %v4706_v43 = vld [vmem:[%s6176_s6 + $0x2b4] ss:$8 sps:$4 sm:$0xff]  }
 0x6d7   :  { %1915 = vmatpush1.bf16.msra.mxu1 %v4659_v45  ;;  %v4704_v45 = vld [vmem:[%s6176_s6 + $0x2b0] ss:$8 sps:$4 sm:$0xff]  }
 0x6d8   :  { %1916 = vmatprep.subr.bf16.mxu1 %v4664_v46  ;;  %v4709_v46 = vld [vmem:[%s6176_s6 + $0x2c4] ss:$8 sps:$4 sm:$0xff]  }
 0x6db   :  { %1917 = vmatpush1.bf16.msra.mxu1 %v4662_v48  ;;  %v4707_v48 = vld [vmem:[%s6176_s6 + $0x2c0] ss:$8 sps:$4 sm:$0xff]  }
 0x6dc   :  { %2171 = vmatprep.subr.bf16.mxu1 %v4667_v52  ;;  %v4713_v52 = vld [vmem:[%s6176_s6 + $0x2e0] ss:$8 sps:$4 sm:$0xff]  }
 0x6de   :  { %1921 = vmatmul.mubr.bf16.vlgmr.msra.gmra.mrb[32].mxu1 %v1420_v1  ;;  %v4671_v1 = vld [vmem:[%s6176_s6 + $0x200] ss:$8 sps:$4 sm:$0xff]  }
 0x6df   :  { %2172 = vmatpush1.bf16.msra.mxu1 %v4665_v44  ;;  %3983 = vmatprep.mubr.msk.bf16.mxu1 %vm951_vm2, %v1986_v56  ;;  %v2514_v56 = vld [vmem:[%s6177_s7 + $0x48] sm:$0xff] }
 0x6e0   :  { %2173 = vmatprep.subr.bf16.mxu1 %v4670_v57  ;;  %v5592_v62 = vpack.c.bf16 %v2514_v56, %v2513_v4  ;;  %v4725_v44 = vld [vmem:[%s6176_s6 + $0x320] ss:$8 sps:$4 sm:$0xff]   ;;  %v4733_v57 = vld [vmem:[%s6176_s6 + $0x344] ss:$8 sps:$4 sm:$0xff]   ;;  %v4742_v4 = vld [vmem:[%s6176_s6 + $0x374] ss:$8 sps:$4 sm:$0xff]  }
 0x6e1   :  { %v4740_v56 = vld [vmem:[%s6176_s6 + $0x370] ss:$8 sps:$4 sm:$0xff]  }
 0x6e2   :  { %4374 = vmatpush1.bf16.msra.mxu0 %v5592_v62 }
 0x6e3   :  { %2174 = vmatpush1.bf16.msra.mxu1 %v4668_v59  ;;  %4375 = vmatprep.subr.bf16.mxu0 %v4812_v26  ;;  %v4731_v59 = vld [vmem:[%s6176_s6 + $0x340] ss:$8 sps:$4 sm:$0xff]  }
 0x6e4   :  { %2175 = vmatprep.subr.bf16.mxu1 %v4673_v53  ;;  %v4739_v53 = vld [vmem:[%s6176_s6 + $0x364] ss:$8 sps:$4 sm:$0xff]  }
 0x6e6   :  { %4377 = vmatpush1.bf16.msra.mxu0 %v5608_v13 }
 0x6e7   :  { %2176 = vmatpush1.bf16.msra.mxu1 %v4671_v1  ;;  %4378 = vmatprep.subr.bf16.mxu0 %v4812_v26  ;;  %v4737_v1 = vld [vmem:[%s6176_s6 + $0x360] ss:$8 sps:$4 sm:$0xff]  }
 0x6e8   :  { %2177 = vmatprep.subr.bf16.mxu1 %v4676_v61  ;;  %v4745_v61 = vld [vmem:[%s6176_s6 + $0x384] ss:$8 sps:$4 sm:$0xff]  }
 0x6ea   :  { %4380 = vmatpush1.bf16.msra.mxu0 %v5624_v12 }
 0x6eb   :  { %2178 = vmatpush1.bf16.msra.mxu1 %v4674_v63  ;;  %4381 = vmatprep.subr.bf16.mxu0 %v4812_v26  ;;  %v4743_v63 = vld [vmem:[%s6176_s6 + $0x380] ss:$8 sps:$4 sm:$0xff]  }
 0x6ec   :  { %2179 = vmatprep.subr.bf16.mxu1 %v4679_v11  ;;  %v4751_v11 = vld [vmem:[%s6176_s6 + $0x3a4] ss:$8 sps:$4 sm:$0xff]  }
 0x6ef   :  { %2180 = vmatpush1.bf16.msra.mxu1 %v4677_v8  ;;  %v4749_v8 = vld [vmem:[%s6176_s6 + $0x3a0] ss:$8 sps:$4 sm:$0xff]  }
 0x6f0   :  { %2181 = vmatprep.subr.bf16.mxu1 %v4682_v9  ;;  %v2519_v9 = vld [vmem:[%s6177_s7 + $0x70] sm:$0xff] }
 0x6f3   :  { %2182 = vmatpush1.bf16.msra.mxu1 %v4680_v15  ;;  %v2520_v15 = vld [vmem:[%s6177_s7 + $0x78] sm:$0xff] }
 0x6f4   :  { %2183 = vmatprep.subr.bf16.mxu1 %v4685_v16  ;;  %v5793_v16 = vpack.c.bf16 %v2520_v15, %v2519_v9 }
 0x6f6   :  { %4383 = vmatpush1.bf16.msra.mxu0 %v5793_v16 }
 0x6f7   :  { %2184 = vmatpush1.bf16.msra.mxu1 %v4683_v17  ;;  %4384 = vmatprep.subr.bf16.mxu0 %v4812_v26  ;;  %v2523_v17 = vld [vmem:[%s6177_s7 + $0x90] sm:$0xff] }
 0x6f8   :  { %2185 = vmatprep.subr.bf16.mxu1 %v4688_v18  ;;  %v2524_v18 = vld [vmem:[%s6177_s7 + $0x98] sm:$0xff] }
 0x6fb   :  { %2186 = vmatpush1.bf16.msra.mxu1 %v4686_v19  ;;  %v5813_v19 = vpack.c.bf16 %v2524_v18, %v2523_v17 }
 0x6fc   :  { %2187 = vmatprep.subr.bf16.mxu1 %v4691_v20  ;;  %v2525_v20 = vld [vmem:[%s6177_s7 + $0xa0] sm:$0xff] }
 0x6ff   :  { %2188 = vmatpush1.bf16.msra.mxu1 %v4689_v21  ;;  %v2526_v21 = vld [vmem:[%s6177_s7 + $0xa8] sm:$0xff] }
 0x700   :  { %2189 = vmatprep.subr.bf16.mxu1 %v4694_v22  ;;  %v5823_v22 = vpack.c.bf16 %v2526_v21, %v2525_v20 }
 0x703   :  { %2190 = vmatpush1.bf16.msra.mxu1 %v4692_v23  ;;  %v2527_v23 = vld [vmem:[%s6177_s7 + $0xb0] sm:$0xff] }
 0x704   :  { %2191 = vmatprep.subr.bf16.mxu1 %v4697_v24  ;;  %v2528_v24 = vld [vmem:[%s6177_s7 + $0xb8] sm:$0xff] }
 0x707   :  { %2192 = vmatpush1.bf16.msra.mxu1 %v4695_v27  ;;  %v5832_v27 = vpack.c.bf16 %v2528_v24, %v2527_v23 }
 0x708   :  { %2193 = vmatprep.subr.bf16.mxu1 %v4700_v28  ;;  %v2530_v28 = vld [vmem:[%s6178_s8 + $0x8] sm:$0xff] }
 0x70b   :  { %2194 = vmatpush1.bf16.msra.mxu1 %v4698_v29  ;;  %v2532_v29 = vld [vmem:[%s6178_s8 + $0x18] sm:$0xff] }
 0x70c   :  { %2195 = vmatprep.subr.bf16.mxu1 %v4703_v33  ;;  %v5842_v33 = vpack.c.bf16 %v2532_v29, %v2530_v28 }
 0x70f   :  { %2196 = vmatpush1.bf16.msra.mxu1 %v4701_v40 }
 0x710   :  { %2197 = vmatprep.subr.bf16.mxu1 %v4706_v43 }
 0x713   :  { %2198 = vmatpush1.bf16.msra.mxu1 %v4704_v45 }
 0x714   :  { %2199 = vmatprep.subr.bf16.mxu1 %v4709_v46 }
 0x717   :  { %2200 = vmatpush1.bf16.msra.mxu1 %v4707_v48 }
 0x718   :  { %2458 = vmatprep.subr.bf16.mxu1 %v4712_v49 }
 0x71a   :  { %2204 = vmatmul.mubr.bf16.vlgmr.msra.gmra.mrb[32].mxu1 %v1985_v3  ;;  %v4719_v3 = vld [vmem:[%s6176_s6 + $0x300] ss:$8 sps:$4 sm:$0xff]  }
 0x71b   :  { %2459 = vmatpush1.bf16.msra.mxu1 %v4710_v50  ;;  %4049 = vmatprep.mubr.msk.bf16.mxu1 %vm951_vm2, %v2273_v42  ;;  %v4727_v42 = vld [vmem:[%s6176_s6 + $0x324] ss:$8 sps:$4 sm:$0xff]   ;;  %vm2547_vm2 = vcmask 519168  }
 0x71c   :  { %2460 = vmatprep.subr.bf16.mxu1 %v4715_v51 }
 0x71f   :  { %2461 = vmatpush1.bf16.msra.mxu1 %v4713_v52 }
 0x720   :  { %2462 = vmatprep.subr.bf16.mxu1 %v4718_v30 }
 0x723   :  { %2463 = vmatpush1.bf16.msra.mxu1 %v4716_v41 }
 0x724   :  { %2464 = vmatprep.subr.bf16.mxu1 %v4721_v0 }
 0x727   :  { %2465 = vmatpush1.bf16.msra.mxu1 %v4719_v3 }
 0x728   :  { %2466 = vmatprep.subr.bf16.mxu1 %v4724_v34 }
 0x72b   :  { %2467 = vmatpush1.bf16.msra.mxu1 %v4722_v39 }
 0x72c   :  { %2468 = vmatprep.subr.bf16.mxu1 %v4727_v42 }
 0x72f   :  { %2469 = vmatpush1.bf16.msra.mxu1 %v4725_v44 }
 0x730   :  { %2470 = vmatprep.subr.bf16.mxu1 %v4730_v2 }
 0x733   :  { %2471 = vmatpush1.bf16.msra.mxu1 %v4728_v5 }
 0x734   :  { %2472 = vmatprep.subr.bf16.mxu1 %v4733_v57 }
 0x737   :  { %2473 = vmatpush1.bf16.msra.mxu1 %v4731_v59  ;;  %v2529_v59 = vld [vmem:[%s6178_s8] sm:$0xff] }
 0x738   :  { %2474 = vmatprep.subr.bf16.mxu1 %v4736_v60  ;;  %v2531_v60 = vld [vmem:[%s6178_s8 + $0x10] sm:$0xff] }
 0x73b   :  { %2475 = vmatpush1.bf16.msra.mxu1 %v4734_v35 }
 0x73c   :  { %2476 = vmatprep.subr.bf16.mxu1 %v4739_v53  ;;  %v2534_v53 = vld [vmem:[%s6178_s8 + $0x28] sm:$0xff] }
 0x73f   :  { %2477 = vmatpush1.bf16.msra.mxu1 %v4737_v1  ;;  %v2536_v1 = vld [vmem:[%s6178_s8 + $0x38] sm:$0xff] }
 0x740   :  { %2478 = vmatprep.subr.bf16.mxu1 %v4742_v4 }
 0x743   :  { %2479 = vmatpush1.bf16.msra.mxu1 %v4740_v56  ;;  %v5872_v56 = vpack.c.bf16 %v2531_v60, %v2529_v59 }
 0x744   :  { %2480 = vmatprep.subr.bf16.mxu1 %v4745_v61 }
 0x747   :  { %2481 = vmatpush1.bf16.msra.mxu1 %v4743_v63  ;;  %v5874_v63 = vpack.c.bf16 %v2536_v1, %v2534_v53 }
 0x748   :  { %2482 = vmatprep.subr.bf16.mxu1 %v4748_v6  ;;  %v2533_v6 = vld [vmem:[%s6178_s8 + $0x20] sm:$0xff] }
 0x74b   :  { %2483 = vmatpush1.bf16.msra.mxu1 %v4746_v7  ;;  %v2535_v7 = vld [vmem:[%s6178_s8 + $0x30] sm:$0xff] }
 0x74c   :  { %2484 = vmatprep.subr.bf16.mxu1 %v4751_v11  ;;  %v5884_v11 = vpack.c.bf16 %v2535_v7, %v2533_v6  ;;  %v4056_v6 = vld [vmem:[%s6180_s9 + $0x2] sm:$0x3] }
 0x74d   :  { %v4755_v7 = vld [vmem:[%s6179_s10 + $0x60] sm:$0xff]  }
 0x74f   :  { %2485 = vmatpush1.bf16.msra.mxu1 %v4749_v8 }
 0x750   :  { %2486 = vmatprep.subr.bf16.mxu1 %v4754_v10 }
 0x753   :  { %2487 = vmatpush1.bf16.msra.mxu1 %v4752_v14 }
 0x756   :  { %2491 = vmatmul.mubr.bf16.vlgmr.msra.gmra.mrb[32].mxu1 %v2272_v37  ;;  %v5803_v37 = vpack.c.bf16 %v2522_v36, %v2521_v31 }
 0x757   :  { %3335 = vmatprep.mubr.bf16.mxu1 %v4811_v25 }
 0x758   :  { %4386 = vmatpush1.bf16.msra.mxu0 %v5803_v37 }
 0x759   :  { %4387 = vmatprep.subr.bf16.mxu0 %v4812_v26 }
 0x75c   :  { %4389 = vmatpush1.bf16.msra.mxu0 %v5813_v19 }
 0x75d   :  { %4390 = vmatprep.subr.bf16.mxu0 %v4812_v26 }
 0x760   :  { %4392 = vmatpush1.bf16.msra.mxu0 %v5823_v22 }
 0x761   :  { %4393 = vmatprep.subr.bf16.mxu0 %v4812_v26 }
 0x764   :  { %4395 = vmatpush1.bf16.msra.mxu0 %v5832_v27 }
 0x765   :  { %4397 = vmatprep.subr.bf16.mxu0 %v5842_v33 }
 0x829   :  { %v5845_v40 = vpop.f32.mrb[32].mxu1 }
 0x82a   :  { %v5847_v43 = vpop.f32.mrb[33].mxu1 }
 0x82b   :  { %v5849_v45 = vpop.f32.mrb[34].mxu1  ;;  %v2546_v49 = vsel %vm88_vm0, %v5847_v43, 0.0 }
 0x82c   :  { %v2538_v46 = vsel %vm2537_vm1, %v5849_v45, 0.0  ;;  %v5853_v48 = vpop.f32.mrb[35].mxu1 }
 0x82d   :  { %v2539_v50 = vadd.f32 %v2538_v46, %v5845_v40  ;;  %v2548_v51 = vsel %vm2547_vm2, %v5853_v48, 0.0 }
 0x82e   :  { %v2549_v52 = vadd.f32 %v2548_v51, %v2546_v49 }
 0x82f   :  { %v2540_v30 = vrot.slane %v2539_v50, 4 }
 0x830   :  { %v2550_v41 = vrot.slane %v2549_v52, 4 }
 0x831   :  { %v2541_v0 = vadd.f32 %v2540_v30, %v2539_v50 }
 0x832   :  { %v2551_v3 = vadd.f32 %v2550_v41, %v2549_v52 }
 0x833   :  { %v2542_v34 = vrot.slane %v2541_v0, 2 }
 0x834   :  { %v2552_v39 = vrot.slane %v2551_v3, 2 }
 0x835   :  { %v2543_v42 = vadd.f32 %v2542_v34, %v2541_v0 }
 0x836   :  { %v2553_v44 = vadd.f32 %v2552_v39, %v2551_v3 }
 0x837   :  { %v2544_v2 = vrot.slane %v2543_v42, 1 }
 0x838   :  { %v2554_v5 = vrot.slane %v2553_v44, 1 }
 0x839   :  { %v2545_v57 = vadd.f32 %v2544_v2, %v2543_v42 }
 0x83a   :  { %v2555_v35 = vadd.f32 %v2554_v5, %v2553_v44 }
 0x83b   :  { %v2557_v61 = vmul.f32 0.083333336, %v2545_v57 }
 0x83c   :  { %v2558_v4 = vmul.f32 0.083333336, %v2555_v35 }
 0x83e   :  { %4050 = vmatprep.mubr.msk.f32.mxu0 %vm88_vm0, %v2558_v4 }
 0x83f   :  { %2627 = vmatmul.mubr.f32.vlgmr.msra.gmra.mrb[10].mxu0 %v2557_v61  ;;  %v2917_v61 = vld [vmem:[%s6180_s9] sm:$0x3] }
 0x840   :  { %4399 = vmatpush1.bf16.msra.mxu0 %v5872_v56  ;;  %2700 = vmatprep.mubr.f32.mxu0 %v4813_v54 }
 0x841   :  { %4401 = vmatprep.subr.bf16.mxu0 %v5874_v63 }
 0x844   :  { %4403 = vmatpush1.bf16.msra.mxu0 %v5884_v11 }
 0x845   :  { %4404 = vmatprep.subr.bf16.mxu0 %v4812_v26 }
 0x912   :  { %v2628_v8 = vpop.f32.mrb[10].mxu0 }
 0x913   :  { %v2630_v10 = vpop.f32.mrb[11].mxu0  ;;  %4051 = vmatmul.mubr.msk.f32.vlgmr.msra.gmra.mrb[20].mxu0 %vm2632_vm4, %v2628_v8  ;;  %v4757_v8 = vld [vmem:[%s6179_s10 + $0x70] sm:$0xff]  }
 0x914   :  { %4406 = vmatpush1.bf16.msra.mxu0 %v5531_v55  ;;  %v4758_v10 = vld [vmem:[%s6179_s10 + $0x78] sm:$0xff]  }
 0x915   :  { %4407 = vmatprep.subr.bf16.mxu0 %v4812_v26 }
 0x918   :  { %4409 = vmatpush1.bf16.msra.mxu0 %v5537_v32 }
 0x919   :  { %4410 = vmatprep.subr.bf16.mxu0 %v4812_v26 }
 0x91c   :  { %4412 = vmatpush1.bf16.msra.mxu0 %v5556_v58 }
 0x91d   :  { %4413 = vmatprep.subr.bf16.mxu0 %v4812_v26 }
 0x920   :  { %4415 = vmatpush1.bf16.msra.mxu0 %v5576_v47 }
 0x921   :  { %4416 = vmatprep.subr.bf16.mxu0 %v4812_v26 }
 0x924   :  { %4418 = vmatpush1.bf16.msra.mxu0 %v5592_v62 }
 0x925   :  { %4419 = vmatprep.subr.bf16.mxu0 %v4812_v26 }
 0x928   :  { %4421 = vmatpush1.bf16.msra.mxu0 %v5608_v13 }
 0x929   :  { %4422 = vmatprep.subr.bf16.mxu0 %v4812_v26 }
 0x92c   :  { %4424 = vmatpush1.bf16.msra.mxu0 %v5624_v12 }
 0x92d   :  { %4425 = vmatprep.subr.bf16.mxu0 %v4812_v26 }
 0x930   :  { %4427 = vmatpush1.bf16.msra.mxu0 %v5793_v16 }
 0x931   :  { %4428 = vmatprep.subr.bf16.mxu0 %v4812_v26 }
 0x934   :  { %4430 = vmatpush1.bf16.msra.mxu0 %v5803_v37 }
 0x935   :  { %4431 = vmatprep.subr.bf16.mxu0 %v4812_v26 }
 0x938   :  { %4433 = vmatpush1.bf16.msra.mxu0 %v5813_v19 }
 0x939   :  { %4434 = vmatprep.subr.bf16.mxu0 %v4812_v26 }
 0x93c   :  { %4436 = vmatpush1.bf16.msra.mxu0 %v5823_v22 }
 0x93d   :  { %4437 = vmatprep.subr.bf16.mxu0 %v4812_v26 }
 0x940   :  { %4439 = vmatpush1.bf16.msra.mxu0 %v5832_v27 }
 0x941   :  { %4441 = vmatprep.subr.bf16.mxu0 %v5842_v33 }
 0x9e6   :  { %v2702_v55 = vpop.f32.mrb[20].mxu0 }
 0x9e7   :  { %v2710_v32 = vrot.slane %v2702_v55, %v5268_v38  ;;  %v2704_v58 = vpop.f32.mrb[21].mxu0  ;;  %v4759_v55 = vld [vmem:[%s6179_s10 + $0x80] sm:$0xff]  }
 0x9e8   :  { %v2714_v47 = vrot.slane %v2704_v58, %v5268_v38  ;;  %v4761_v58 = vld [vmem:[%s6179_s10 + $0x90] sm:$0xff]  }
 0x9e9   :  { %v2715_v62 = vsub.f32 %v5845_v40, %v2710_v32  ;;  %v2717_v13 = vsub.f32 %v5849_v45, %v2710_v32  ;;  %v4760_v32 = vld [vmem:[%s6179_s10 + $0x88] sm:$0xff]  }
 0x9ea   :  { %v2716_v12 = vsub.f32 %v5847_v43, %v2714_v47  ;;  %v2718_v14 = vsub.f32 %v5853_v48, %v2714_v47  ;;  %v4762_v47 = vld [vmem:[%s6179_s10 + $0x98] sm:$0xff]  }
 0x9eb   :  { %v2719_v9 = vmul.f32 %v2715_v62, %v2715_v62  ;;  %v2721_v26 = vmul.f32 %v2717_v13, %v2717_v13 }
 0x9ec   :  { %v2720_v15 = vmul.f32 %v2716_v12, %v2716_v12  ;;  %v2722_v16 = vmul.f32 %v2718_v14, %v2718_v14 }
 0x9ed   :  { %v2723_v31 = vsel %vm2537_vm1, %v2721_v26, 0.0  ;;  %v4770_v26 = vld [vmem:[%s6179_s10 + $0xc8] sm:$0xff]  }
 0x9ee   :  { %v2724_v36 = vadd.f32 %v2723_v31, %v2719_v9  ;;  %v2731_v37 = vsel %vm88_vm0, %v2720_v15, 0.0  ;;  %v2732_v17 = vsel %vm2547_vm2, %v2722_v16, 0.0  ;;  %v4768_v9 = vld [vmem:[%s6179_s10 + $0xc0] sm:$0xff]   ;;  %v4772_v15 = vld [vmem:[%s6179_s10 + $0xd0] sm:$0xff]   ;;  %v4774_v16 = vld [vmem:[%s6179_s10 + $0xd8] sm:$0xff]  }
 0x9ef   :  { %v2733_v18 = vadd.f32 %v2732_v17, %v2731_v37  ;;  %v4776_v31 = vld [vmem:[%s6179_s10 + $0xe0] sm:$0xff]   ;;  %v4780_v37 = vld [vmem:[%s6179_s10 + $0xf0] sm:$0xff]   ;;  %v4782_v17 = vld [vmem:[%s6179_s10 + $0xf8] sm:$0xff]  }
 0x9f0   :  { %v2725_v19 = vrot.slane %v2724_v36, 4 }
 0x9f1   :  { %v2734_v20 = vrot.slane %v2733_v18, 4 }
 0x9f2   :  { %v2726_v21 = vadd.f32 %v2725_v19, %v2724_v36  ;;  %v4778_v36 = vld [vmem:[%s6179_s10 + $0xe8] sm:$0xff]  }
 0x9f3   :  { %v2735_v22 = vadd.f32 %v2734_v20, %v2733_v18  ;;  %v4784_v18 = vld [vmem:[%s6179_s10 + $0x100] sm:$0xff]   ;;  %v4786_v19 = vld [vmem:[%s6179_s10 + $0x108] sm:$0xff]   ;;  %v4788_v20 = vld [vmem:[%s6179_s10 + $0x110] sm:$0xff]  }
 0x9f4   :  { %v2727_v23 = vrot.slane %v2726_v21, 2 }
 0x9f5   :  { %v2736_v24 = vrot.slane %v2735_v22, 2 }
 0x9f6   :  { %v2728_v27 = vadd.f32 %v2727_v23, %v2726_v21  ;;  %v4790_v21 = vld [vmem:[%s6179_s10 + $0x118] sm:$0xff]  }
 0x9f7   :  { %v2737_v28 = vadd.f32 %v2736_v24, %v2735_v22 }
 0x9f8   :  { %v2729_v29 = vrot.slane %v2728_v27, 1 }
 0x9f9   :  { %v2738_v33 = vrot.slane %v2737_v28, 1 }
 0x9fa   :  { %v2730_v40 = vadd.f32 %v2729_v29, %v2728_v27 }
 0x9fb   :  { %v2739_v43 = vadd.f32 %v2738_v33, %v2737_v28 }
 0x9fc   :  { %v2740_v46 = vmul.f32 0.083333336, %v2730_v40 }
 0x9fd   :  { %v2741_v45 = vmul.f32 0.083333336, %v2739_v43 }
 0x9ff   :  { %4052 = vmatprep.mubr.msk.f32.mxu0 %vm88_vm0, %v2741_v45 }
 0xa00   :  { %2810 = vmatmul.mubr.f32.vlgmr.msra.gmra.mrb[22].mxu0 %v2740_v46 }
 0xa01   :  { %4443 = vmatpush1.bf16.msra.mxu0 %v5872_v56  ;;  %2882 = vmatprep.mubr.f32.mxu0 %v4813_v54 }
 0xa02   :  { %4445 = vmatprep.subr.bf16.mxu0 %v5874_v63  ;;  %v4109_v63 = vld [vmem:[%s6180_s9 + $0x4] sm:$0x3] }
 0xa05   :  { %4447 = vmatpush1.bf16.msra.mxu0 %v5884_v11  ;;  %v4756_v11 = vld [vmem:[%s6179_s10 + $0x68] sm:$0xff]  }
 0xad3   :  { %v2811_v48 = vpop.f32.mrb[22].mxu0 }
 0xad4   :  { %v2813_v49 = vpop.f32.mrb[23].mxu0  ;;  %4053 = vmatmul.mubr.msk.f32.vlgmr.msra.gmra.mrb[24].mxu0 %vm2632_vm4, %v2811_v48 }
 0xad5   :  { %2960 = vmatprep.mubr.bf16.mxu0 %v4811_v25 }
 0xba7   :  { %v2884_v50 = vpop.f32.mrb[24].mxu0 }
 0xba8   :  { %v2885_v51 = vadd.f32 1e-05, %v2884_v50  ;;  %v2886_v52 = vpop.f32.mrb[25].mxu0 }
 0xba9   :  { %v2887_v30 = vadd.f32 1e-05, %v2886_v52 }
 0xbaa   :  { %4807 = vrsqrt.f32 %v2885_v51  ;;  %v4767_v51 = vld [vmem:[%s6179_s10] sm:$0xff]  }
 0xbab   :  { %4809 = vrsqrt.f32 %v2887_v30 }
 0xbb4   :  { %v4808_v41 = vpop.eup %4807 }
 0xbb5   :  { %v4810_v0 = vpop.eup %4809  ;;  %v2894_v54 = vrot.slane %v4808_v41, %v5268_v38 }
 0xbb6   :  { %v2898_v3 = vrot.slane %v4810_v0, %v5268_v38  ;;  %v4769_v0 = vld [vmem:[%s6179_s10 + $0x8] sm:$0xff]  }
 0xbb7   :  { %v2899_v34 = vmul.f32 %v2894_v54, %v2715_v62  ;;  %v2901_v39 = vmul.f32 %v2894_v54, %v2717_v13  ;;  %v4763_v62 = vld [vmem:[%s6179_s10 + $0xa0] sm:$0xff]   ;;  %v4764_v13 = vld [vmem:[%s6179_s10 + $0xa8] sm:$0xff]   ;;  %v4771_v54 = vld [vmem:[%s6179_s10 + $0x10] sm:$0xff]  }
 0xbb8   :  { %v2900_v42 = vmul.f32 %v2898_v3, %v2716_v12  ;;  %v2902_v44 = vmul.f32 %v2898_v3, %v2718_v14  ;;  %v4765_v12 = vld [vmem:[%s6179_s10 + $0xb0] sm:$0xff]   ;;  %v4766_v14 = vld [vmem:[%s6179_s10 + $0xb8] sm:$0xff]  }
 0xbb9   :  { %vm2903_vm5 = vcmp.ge.f32.partialorder %v2899_v34, 0.0  ;;  %vm2905_vm6 = vcmp.ge.f32.partialorder %v2901_v39, 0.0  ;;  %v2907_v2 = vmul.f32 0.2, %v2899_v34  ;;  %v2909_v5 = vmul.f32 0.2, %v2901_v39 }
 0xbba   :  { %vm2904_vm7 = vcmp.ge.f32.partialorder %v2900_v42, 0.0  ;;  %vm2906_vm8 = vcmp.ge.f32.partialorder %v2902_v44, 0.0  ;;  %v2908_v57 = vmul.f32 0.2, %v2900_v42  ;;  %v2910_v59 = vmul.f32 0.2, %v2902_v44 }
 0xbbb   :  { %v2911_v60 = vsel %vm2903_vm5, %v2899_v34, %v2907_v2  ;;  %v2913_v35 = vsel %vm2905_vm6, %v2901_v39, %v2909_v5  ;;  %v4773_v3 = vld [vmem:[%s6179_s10 + $0x18] sm:$0xff]   ;;  %v4775_v34 = vld [vmem:[%s6179_s10 + $0x20] sm:$0xff]   ;;  %v4777_v39 = vld [vmem:[%s6179_s10 + $0x28] sm:$0xff]  }
 0xbbc   :  { %v2912_v53 = vsel %vm2904_vm7, %v2900_v42, %v2908_v57  ;;  %v2914_v1 = vsel %vm2906_vm8, %v2902_v44, %v2910_v59  ;;  %v2915_v4 = vpack.c.bf16 %v2913_v35, %v2911_v60  ;;  %v4779_v42 = vld [vmem:[%s6179_s10 + $0x30] sm:$0xff]   ;;  %v4781_v44 = vld [vmem:[%s6179_s10 + $0x38] sm:$0xff]   ;;  %v4783_v2 = vld [vmem:[%s6179_s10 + $0x40] sm:$0xff]  }
 0xbbd   :  { %v5933_v56 = vpack.c.bf16 %v2914_v1, %v2912_v53  ;;  %v4785_v5 = vld [vmem:[%s6179_s10 + $0x48] sm:$0xff]   ;;  %v4787_v57 = vld [vmem:[%s6179_s10 + $0x50] sm:$0xff]   ;;  %v4789_v59 = vld [vmem:[%s6179_s10 + $0x58] sm:$0xff]  }
 0xbbe   :  { %v5936_v38 = vsel %vm942_vm3, %v2915_v4, 0  ;;  %v4149_v35 = vld [vmem:[%s6180_s9 + $0x6] sm:$0x3]  ;;  %v4792_v1 = vld [vmem:[%s6179_s10 + $0x128] sm:$0xff]   ;;  %v4793_v4 = vld [vmem:[%s6179_s10 + $0x130] sm:$0xff]  }
 0xbbf   :  { %4054 = vmatprep.subr.msk.bf16.mxu0 %vm942_vm3, %v5933_v56  ;;  %4110 = vmatprep.subr.msk.bf16.mxu1 %vm942_vm3, %v5933_v56  ;;  %v4791_v53 = vld [vmem:[%s6179_s10 + $0x120] sm:$0xff]  }
 0xbc0   :  { %2929 = vmatpush1.bf16.msra.mxu0 %v5936_v38  ;;  %3304 = vmatpush1.bf16.msra.mxu1 %v5936_v38 }
 0xbc1   :  { %4057 = vmatprep.subr.msk.bf16.mxu0 %vm942_vm3, %v5933_v56  ;;  %3446 = vmatprep.subr.bf16.mxu1 %v4811_v25 }
 0xbc3   :  { %4055 = vmatmul.mubr.msk.bf16.vlgmr.msra.gmra.mrb[28].mxu0 %vm2918_vm9, %v2917_v61  ;;  %4111 = vmatmul.mubr.msk.bf16.vlgmr.msra.gmra.mrb[36].mxu1 %vm2918_vm9, %v4109_v63  ;;  %v4796_v61 = vld [vmem:[%s6179_s10 + $0x148] sm:$0xff]   ;;  %v4797_v63 = vld [vmem:[%s6179_s10 + $0x150] sm:$0xff]  }
 0xbc4   :  { %3001 = vmatpush1.bf16.msra.mxu0 %v5936_v38  ;;  %3032 = vmatprep.mubr.bf16.mxu0 %v4811_v25 }
 0xbc5   :  { %3143 = vmatprep.subr.bf16.mxu0 %v4811_v25  ;;  %3447 = vmatpush1.bf16.msra.mxu1 %v4768_v9 }
 0xbc6   :  { %3448 = vmatprep.subr.bf16.mxu1 %v4811_v25 }
 0xbc9   :  { %3449 = vmatpush1.bf16.msra.mxu1 %v4770_v26 }
 0xbca   :  { %3450 = vmatprep.subr.bf16.mxu1 %v4811_v25 }
 0xbcb   :  { %4058 = vmatmul.mubr.msk.bf16.vlgmr.msra.gmra.mrb[32].mxu0 %vm2918_vm9, %v4056_v6  ;;  %v4798_v6 = vld [vmem:[%s6179_s10 + $0x158] sm:$0xff]  }
 0xbcc   :  { %3144 = vmatpush1.bf16.msra.mxu0 %v4755_v7  ;;  %v4799_v7 = vld [vmem:[%s6179_s10 + $0x160] sm:$0xff]  }
 0xbcd   :  { %3145 = vmatprep.subr.bf16.mxu0 %v4811_v25  ;;  %3451 = vmatpush1.bf16.msra.mxu1 %v4772_v15 }
 0xbce   :  { %3452 = vmatprep.subr.bf16.mxu1 %v4811_v25 }
 0xbd0   :  { %3146 = vmatpush1.bf16.msra.mxu0 %v4756_v11  ;;  %v4800_v11 = vld [vmem:[%s6179_s10 + $0x168] sm:$0xff]  }
 0xbd1   :  { %3147 = vmatprep.subr.bf16.mxu0 %v4811_v25  ;;  %3453 = vmatpush1.bf16.msra.mxu1 %v4774_v16 }
 0xbd2   :  { %3454 = vmatprep.subr.bf16.mxu1 %v4811_v25 }
 0xbd4   :  { %3148 = vmatpush1.bf16.msra.mxu0 %v4757_v8  ;;  %v4801_v8 = vld [vmem:[%s6179_s10 + $0x170] sm:$0xff]  }
 0xbd5   :  { %3149 = vmatprep.subr.bf16.mxu0 %v4811_v25  ;;  %3455 = vmatpush1.bf16.msra.mxu1 %v4776_v31 }
 0xbd6   :  { %3456 = vmatprep.subr.bf16.mxu1 %v4811_v25 }
 0xbd8   :  { %3150 = vmatpush1.bf16.msra.mxu0 %v4758_v10  ;;  %v4802_v10 = vld [vmem:[%s6179_s10 + $0x178] sm:$0xff]  }
 0xbd9   :  { %3151 = vmatprep.subr.bf16.mxu0 %v4811_v25  ;;  %3457 = vmatpush1.bf16.msra.mxu1 %v4778_v36 }
 0xbda   :  { %3458 = vmatprep.subr.bf16.mxu1 %v4811_v25 }
 0xbdc   :  { %3152 = vmatpush1.bf16.msra.mxu0 %v4759_v55 }
 0xbdd   :  { %3153 = vmatprep.subr.bf16.mxu0 %v4811_v25  ;;  %3459 = vmatpush1.bf16.msra.mxu1 %v4780_v37 }
 0xbde   :  { %3460 = vmatprep.subr.bf16.mxu1 %v4811_v25 }
 0xbe0   :  { %3154 = vmatpush1.bf16.msra.mxu0 %v4760_v32 }
 0xbe1   :  { %3155 = vmatprep.subr.bf16.mxu0 %v4811_v25  ;;  %3461 = vmatpush1.bf16.msra.mxu1 %v4782_v17 }
 0xbe2   :  { %3462 = vmatprep.subr.bf16.mxu1 %v4811_v25 }
 0xbe4   :  { %3156 = vmatpush1.bf16.msra.mxu0 %v4761_v58 }
 0xbe5   :  { %3157 = vmatprep.subr.bf16.mxu0 %v4811_v25  ;;  %3463 = vmatpush1.bf16.msra.mxu1 %v4784_v18 }
 0xbe6   :  { %3464 = vmatprep.subr.bf16.mxu1 %v4811_v25 }
 0xbe8   :  { %3158 = vmatpush1.bf16.msra.mxu0 %v4762_v47 }
 0xbe9   :  { %3159 = vmatprep.subr.bf16.mxu0 %v4811_v25  ;;  %3465 = vmatpush1.bf16.msra.mxu1 %v4786_v19 }
 0xbea   :  { %3466 = vmatprep.subr.bf16.mxu1 %v4811_v25 }
 0xbec   :  { %3160 = vmatpush1.bf16.msra.mxu0 %v4763_v62 }
 0xbed   :  { %3161 = vmatprep.subr.bf16.mxu0 %v4811_v25  ;;  %3467 = vmatpush1.bf16.msra.mxu1 %v4788_v20 }
 0xbee   :  { %3468 = vmatprep.subr.bf16.mxu1 %v4811_v25 }
 0xbf0   :  { %3162 = vmatpush1.bf16.msra.mxu0 %v4764_v13 }
 0xbf1   :  { %3163 = vmatprep.subr.bf16.mxu0 %v4811_v25  ;;  %3469 = vmatpush1.bf16.msra.mxu1 %v4790_v21 }
 0xbf4   :  { %3164 = vmatpush1.bf16.msra.mxu0 %v4765_v12 }
 0xbf5   :  { %3165 = vmatprep.subr.bf16.mxu0 %v4811_v25 }
 0xbf8   :  { %3166 = vmatpush1.bf16.msra.mxu0 %v4766_v14 }
 0xbf9   :  { %3258 = vmatprep.subr.bf16.mxu0 %v4811_v25 }
 0xc96   :  { %v2962_v22 = vpop.f32.mrb[28].mxu0  ;;  %v3337_v23 = vpop.f32.mrb[36].mxu1 }
 0xc97   :  { %v2964_v24 = vpop.f32.mrb[29].mxu0  ;;  %v3344_v27 = vpack.c.bf16 %v3337_v23, %v3337_v23  ;;  %v3339_v28 = vpop.f32.mrb[37].mxu1  ;;  %v2969_v60 = vpack.c.bf16 %v2962_v22, %v2962_v22  ;;  %v4189_v22 = vld [vmem:[%s6181_s11] ss:$0 sm:$0xff] }
 0xc98   :  { %v2966_v29 = vpop.f32.mrb[30].mxu0  ;;  %v3345_v33 = vpack.c.bf16 %v3339_v28, %v3339_v28  ;;  %v3341_v40 = vpop.f32.mrb[38].mxu1  ;;  %v2970_v41 = vpack.c.bf16 %v2964_v24, %v2964_v24 }
 0xc99   :  { %v2967_v43 = vpop.f32.mrb[31].mxu0  ;;  %v3342_v45 = vpop.f32.mrb[39].mxu1 }
 0xc9a   :  { %4148 = vmatprep.mubr.msk.bf16.mxu1 %vm88_vm0, %v3345_v33 }
 0xc9b   :  { %3479 = vmatmul.mubr.bf16.vlgmr.msra.gmra.mrb[40].mxu1 %v3344_v27 }
 0xc9e   :  { %v3034_v46 = vpop.f32.mrb[32].mxu0 }
 0xc9f   :  { %v3036_v48 = vpop.f32.mrb[33].mxu0  ;;  %v3041_v52 = vpack.c.bf16 %v3034_v46, %v3034_v46 }
 0xca0   :  { %v3042_v49 = vpack.c.bf16 %v3036_v48, %v3036_v48  ;;  %v3038_v50 = vpop.f32.mrb[34].mxu0 }
 0xca1   :  { %v3039_v30 = vpop.f32.mrb[35].mxu0 }
 0xca2   :  { %4095 = vmatprep.mubr.msk.bf16.mxu0 %vm88_vm0, %v3042_v49 }
 0xca3   :  { %3176 = vmatmul.mubr.bf16.vlgmr.msra.gmra.mrb[36].mxu0 %v3041_v52 }
 0xca4   :  { %3259 = vmatpush1.bf16.msra.mxu0 %v4767_v51  ;;  %4108 = vmatprep.mubr.msk.bf16.mxu0 %vm88_vm0, %v2970_v41 }
 0xca5   :  { %3260 = vmatprep.subr.bf16.mxu0 %v4811_v25 }
 0xca8   :  { %3261 = vmatpush1.bf16.msra.mxu0 %v4769_v0 }
 0xca9   :  { %3262 = vmatprep.subr.bf16.mxu0 %v4811_v25 }
 0xcac   :  { %3263 = vmatpush1.bf16.msra.mxu0 %v4771_v54 }
 0xcad   :  { %3264 = vmatprep.subr.bf16.mxu0 %v4811_v25 }
 0xcb0   :  { %3265 = vmatpush1.bf16.msra.mxu0 %v4773_v3 }
 0xcb1   :  { %3266 = vmatprep.subr.bf16.mxu0 %v4811_v25 }
 0xcb4   :  { %3267 = vmatpush1.bf16.msra.mxu0 %v4775_v34 }
 0xcb5   :  { %3268 = vmatprep.subr.bf16.mxu0 %v4811_v25 }
 0xcb8   :  { %3269 = vmatpush1.bf16.msra.mxu0 %v4777_v39 }
 0xcb9   :  { %3270 = vmatprep.subr.bf16.mxu0 %v4811_v25 }
 0xcbc   :  { %3271 = vmatpush1.bf16.msra.mxu0 %v4779_v42 }
 0xcbd   :  { %3272 = vmatprep.subr.bf16.mxu0 %v4811_v25 }
 0xcc0   :  { %3273 = vmatpush1.bf16.msra.mxu0 %v4781_v44 }
 0xcc1   :  { %3274 = vmatprep.subr.bf16.mxu0 %v4811_v25 }
 0xcc4   :  { %3275 = vmatpush1.bf16.msra.mxu0 %v4783_v2 }
 0xcc5   :  { %3276 = vmatprep.subr.bf16.mxu0 %v4811_v25 }
 0xcc8   :  { %3277 = vmatpush1.bf16.msra.mxu0 %v4785_v5 }
 0xcc9   :  { %3278 = vmatprep.subr.bf16.mxu0 %v4811_v25 }
 0xccc   :  { %3279 = vmatpush1.bf16.msra.mxu0 %v4787_v57 }
 0xccd   :  { %3280 = vmatprep.subr.bf16.mxu0 %v4811_v25 }
 0xcd0   :  { %3281 = vmatpush1.bf16.msra.mxu0 %v4789_v59 }
 0xcd1   :  { %4150 = vmatprep.subr.msk.bf16.mxu0 %vm942_vm3, %v5933_v56  ;;  %v4794_v56 = vld [vmem:[%s6179_s10 + $0x138] sm:$0xff]   ;;  %vm3684_vm3 = vcmask 11264  }
 0xcd3   :  { %3291 = vmatmul.mubr.bf16.vlgmr.msra.gmra.mrb[40].mxu0 %v2969_v60 }
 0xcd4   :  { %3493 = vmatpush1.bf16.msra.mxu0 %v5936_v38  ;;  %3524 = vmatprep.mubr.bf16.mxu0 %v4811_v25  ;;  %v4795_v38 = vld [vmem:[%s6179_s10 + $0x140] sm:$0xff]  }
 0xcd5   :  { %3635 = vmatprep.subr.bf16.mxu0 %v4811_v25 }
 0xcdb   :  { %4151 = vmatmul.mubr.msk.bf16.vlgmr.msra.gmra.mrb[44].mxu0 %vm2918_vm9, %v4149_v35 }
 0xcdc   :  { %3636 = vmatpush1.bf16.msra.mxu0 %v4791_v53 }
 0xcdd   :  { %3637 = vmatprep.subr.bf16.mxu0 %v4811_v25 }
 0xce0   :  { %3638 = vmatpush1.bf16.msra.mxu0 %v4792_v1 }
 0xce1   :  { %3639 = vmatprep.subr.bf16.mxu0 %v4811_v25 }
 0xce4   :  { %3640 = vmatpush1.bf16.msra.mxu0 %v4793_v4 }
 0xce5   :  { %3641 = vmatprep.subr.bf16.mxu0 %v4811_v25 }
 0xce8   :  { %3642 = vmatpush1.bf16.msra.mxu0 %v4794_v56 }
 0xce9   :  { %3643 = vmatprep.subr.bf16.mxu0 %v4811_v25 }
 0xcec   :  { %3644 = vmatpush1.bf16.msra.mxu0 %v4795_v38 }
 0xced   :  { %3645 = vmatprep.subr.bf16.mxu0 %v4811_v25 }
 0xcf0   :  { %3646 = vmatpush1.bf16.msra.mxu0 %v4796_v61 }
 0xcf1   :  { %3647 = vmatprep.subr.bf16.mxu0 %v4811_v25 }
 0xcf4   :  { %3648 = vmatpush1.bf16.msra.mxu0 %v4797_v63 }
 0xcf5   :  { %3649 = vmatprep.subr.bf16.mxu0 %v4811_v25 }
 0xcf8   :  { %3650 = vmatpush1.bf16.msra.mxu0 %v4798_v6 }
 0xcf9   :  { %3651 = vmatprep.subr.bf16.mxu0 %v4811_v25 }
 0xcfc   :  { %3652 = vmatpush1.bf16.msra.mxu0 %v4799_v7 }
 0xcfd   :  { %3653 = vmatprep.subr.bf16.mxu0 %v4811_v25 }
 0xd00   :  { %3654 = vmatpush1.bf16.msra.mxu0 %v4800_v11 }
 0xd01   :  { %3655 = vmatprep.subr.bf16.mxu0 %v4811_v25 }
 0xd04   :  { %3656 = vmatpush1.bf16.msra.mxu0 %v4801_v8 }
 0xd05   :  { %3657 = vmatprep.subr.bf16.mxu0 %v4811_v25 }
 0xd08   :  { %3658 = vmatpush1.bf16.msra.mxu0 %v4802_v10 }
 0xd6e   :  { %v3480_v55 = vpop.f32.mrb[40].mxu1 }
 0xd6f   :  { %v3482_v32 = vpop.f32.mrb[41].mxu1 }
 0xd70   :  { %v3483_v58 = vpop.f32.mrb[42].mxu1 }
 0xd71   :  { %v3484_v47 = vpop.f32.mrb[43].mxu1 }
 0xd76   :  { %v3177_v62 = vpop.f32.mrb[36].mxu0 }
 0xd77   :  { %v3179_v13 = vpop.f32.mrb[37].mxu0 }
 0xd78   :  { %v3180_v12 = vpop.f32.mrb[38].mxu0 }
 0xd79   :  { %v3181_v14 = vpop.f32.mrb[39].mxu0 }
 0xda6   :  { %v3292_v9 = vpop.f32.mrb[40].mxu0 }
 0xda7   :  { %v3293_v26 = vadd.f32 %v3292_v9, %v3177_v62  ;;  %v3294_v15 = vpop.f32.mrb[41].mxu0 }
 0xda8   :  { %v3295_v16 = vpop.f32.mrb[42].mxu0 }
 0xda9   :  { %v3486_v31 = vadd.f32 %v3480_v55, %v3293_v26  ;;  %v3296_v36 = vpop.f32.mrb[43].mxu0 }
 0xdae   :  { %v3526_v25 = vpop.f32.mrb[44].mxu0 }
 0xdaf   :  { %v3528_v37 = vpop.f32.mrb[45].mxu0  ;;  %v3533_v19 = vpack.c.bf16 %v3526_v25, %v3526_v25 }
 0xdb0   :  { %v3534_v17 = vpack.c.bf16 %v3528_v37, %v3528_v37  ;;  %v3530_v18 = vpop.f32.mrb[46].mxu0 }
 0xdb1   :  { %v3531_v20 = vpop.f32.mrb[47].mxu0 }
 0xdb2   :  { %4188 = vmatprep.mubr.msk.bf16.mxu0 %vm88_vm0, %v3534_v17 }
 0xdb3   :  { %3668 = vmatmul.mubr.bf16.vlgmr.msra.gmra.mrb[48].mxu0 %v3533_v19 }
 0xe86   :  { %v3669_v21 = vpop.f32.mrb[48].mxu0 }
 0xe87   :  { %v3675_v23 = vadd.f32 %v3669_v21, %v3486_v31  ;;  %v3671_v24 = vpop.f32.mrb[49].mxu0 }
 0xe88   :  { %v3672_v27 = vpop.f32.mrb[50].mxu0 }
 0xe89   :  { %v3683_v28 = vadd.f32 %v4189_v22, %v3675_v23  ;;  %v3673_v29 = vpop.f32.mrb[51].mxu0 }
 0xe8b   :  { %3685 = vst.msk [vmem:[%s6182_s12] sm:$0xf] %vm3684_vm3, %v3683_v28 }

</bundles_post_ra>
